<compile_context>
chip_gen: v5e
topology: v5e:2x2
jax: 0.10.0
libtpu: 0.0.40
codegen_flags: <defaults>
</compile_context>

<pallas_src>
import functools

import jax
import jax.numpy as jnp
from jax import lax
from jax.experimental import pallas as pl
from jax.experimental.pallas import tpu as pltpu

EPS = 1e-5


def _conv_stats_kernel(x_ref, w_ref, b_ref, stash_ref, stats_ref,
                       xpad_ref, patch_ref, *,
                       th, wo, h, w_in, cin, k, dilation, pad, compute_dtype):
    """Pass 1, one (batch, row-tile) grid step.

    r == 0 : build the replicate-padded image into a persistent VMEM scratch and
             zero the per-image BN-partial accumulator.
    every r: im2col patch (kkc, th, wo) via slab copies, one fused MXU matmul,
             lane-dense stash of the pre-BN activation, accumulate BN partials.
    """
    r = pl.program_id(1)
    kkc = k * k * cin
    m = th * wo

    @pl.when(r == 0)
    def _():
        stats_ref[...] = jnp.zeros_like(stats_ref)
        xb = x_ref[0].astype(compute_dtype)                       # (Cin, H, W)
        xpad_ref[:, pad:pad + h, pad:pad + w_in] = xb
        for j in range(pad):                                      # replicate rows
            xpad_ref[:, j:j + 1, pad:pad + w_in] = xb[:, 0:1, :]
            xpad_ref[:, pad + h + j:pad + h + j + 1, pad:pad + w_in] = xb[:, h - 1:h, :]
        for j in range(pad):                                      # replicate cols (+corners)
            xpad_ref[:, :, j:j + 1] = xpad_ref[:, :, pad:pad + 1]
            xpad_ref[:, :, pad + w_in + j:pad + w_in + j + 1] = (
                xpad_ref[:, :, pad + w_in - 1:pad + w_in])

    # im2col: contraction dim (kkc) leading, no per-tap reshape.
    row0 = pl.multiple_of(r * th, th)
    for kh in range(k):
        for kw in range(k):
            c0 = (kh * k + kw) * cin
            patch_ref[c0:c0 + cin, :, :] = xpad_ref[
                :, pl.ds(row0 + kh * dilation, th),
                kw * dilation:kw * dilation + wo]

    # One fused MXU matmul in canonical orientation: (Cout, kkc) x (kkc, m).
    conv = lax.dot_general(
        w_ref[...], patch_ref[...].reshape(kkc, m),
        dimension_numbers=(((1,), (0,)), ((), ())),
        preferred_element_type=jnp.float32)                       # (Cout, m) f32
    conv = conv + b_ref[...]                                      # + (Cout, 1) bias

    # Lane-dense NCHW-flat stash of the pre-BN activation.
    stash_ref[0] = conv.astype(stash_ref.dtype)

    # Shifted (per-tile-mean-centered) BN partials: no E[x^2]-E[x]^2 cancellation.
    s = jnp.sum(conv, axis=1, keepdims=True)                      # (Cout, 1)
    mu = s * (1.0 / float(m))
    d = conv - mu
    m2 = jnp.sum(d * d, axis=1, keepdims=True)
    stats_ref[0, :, 0:1] += s
    stats_ref[0, :, 1:2] += m2
    stats_ref[0, :, 2:3] += mu * s                                # = m * mu_t^2


def _bn_relu_kernel(y_ref, scale_ref, shift_ref, o_ref):
    """Pass 2: pure elementwise folded-BN affine + ReLU over the stashed activation."""
    y = y_ref[0].astype(jnp.float32)                              # (Cout, m)
    o_ref[0] = jnp.maximum(y * scale_ref[...] + shift_ref[...], 0.0).astype(o_ref.dtype)


def _pick_row_tile(ho, wo, max_m=2048):
    """Largest row tile th (multiple of 8 dividing Ho, 128-aligned th*Wo) with
    th*Wo <= max_m; the full extent th = Ho is always a legal fallback."""
    cands = [ho]
    if ho % 8 == 0:
        cands += [t for t in range(8, ho, 8)
                  if ho % t == 0 and (t * wo) % 128 == 0]
    ok = [t for t in cands if t * wo <= max_m]
    if ok:
        return max(ok)
    # TODO(synk): when Ho % 8 != 0 and rows are very wide, pad Ho up to a multiple
    # of 8 and mask the tail instead of a single unaligned tile.
    return min(cands)


def _lane_padded_bytes(shape, dtype):
    """VMEM footprint of a block: 2nd-minor padded to the sublane tile, minor to 128."""
    itemsize = jnp.dtype(dtype).itemsize
    dims = [int(d) for d in shape]
    if len(dims) < 2:
        dims = [1] * (2 - len(dims)) + dims
    sub_tile = 32 // itemsize                                     # f32: 8, bf16: 16
    lanes = -(-dims[-1] // 128) * 128
    subs = -(-dims[-2] // sub_tile) * sub_tile
    lead = 1
    for d in dims[:-2]:
        lead *= d
    return lead * subs * lanes * itemsize


def _vmem_limit_bytes(double_buffered, single_buffered):
    """Generation-aware scoped-VMEM budget (lane-padded accounting)."""
    need = 2 * sum(double_buffered) + sum(single_buffered) + (4 << 20)
    try:
        cap = int(pltpu.get_tpu_info().vmem_capacity_bytes)       # 128 MiB v5e/v6e, 64 MiB v7x
    except Exception:
        cap = 64 << 20                                            # conservative default
    cap = (cap * 3) // 4                                          # ~96 MiB v5e/v6e, ~48 MiB v7x
    return int(min(max(need, 32 << 20), cap))


def dense_cnn_block(x_nchw, w_oihw, conv_bias, gamma, beta, *, dilation=1,
                    compute_dtype=None, stash_dtype=None):
    """Forward pass of DenseCNNBlock. Inputs stay in PyTorch NCHW / OIHW layouts.

    compute_dtype: dtype of the conv operands fed to the MXU (pass jnp.bfloat16 on
      v6e/v7x to halve DMA/VMEM; accumulation and BN math always stay f32).
    stash_dtype: dtype of the pass-1 pre-BN activation stash in HBM.
    """
    N, Cin, H, W = map(int, x_nchw.shape)
    Cout, _, K, _ = map(int, w_oihw.shape)
    pad = (dilation * (K - 1) + 1) // 2
    halo = dilation * (K - 1)
    Ho = H + 2 * pad - halo
    Wo = W + 2 * pad - halo
    Hp, Wp = H + 2 * pad, W + 2 * pad
    kkc = K * K * Cin

    compute_dtype = compute_dtype or x_nchw.dtype
    stash_dtype = stash_dtype or x_nchw.dtype

    # OIHW -> (Cout, K*K*Cin) with (kh, kw, ci) order matching the im2col patch rows.
    w_cm = jnp.transpose(w_oihw, (0, 2, 3, 1)).reshape(Cout, kkc).astype(compute_dtype)
    b_col = conv_bias.reshape(Cout, 1).astype(jnp.float32)

    th = _pick_row_tile(Ho, Wo)
    n_t = Ho // th
    m = th * Wo
    grid = (N, n_t)

    kern1 = functools.partial(
        _conv_stats_kernel, th=th, wo=Wo, h=H, w_in=W, cin=Cin,
        k=K, dilation=dilation, pad=pad, compute_dtype=compute_dtype)

    # TODO(synk): for very large images on v7x (64 MiB VMEM), switch x to
    # memory_space=pl.ANY and manually DMA only the (th + halo)-row window per row
    # tile (double-buffered) instead of staging the full image per batch element.
    x_spec = pl.BlockSpec((1, Cin, H, W), lambda n, r: (n, 0, 0, 0))
    w_spec = pl.BlockSpec((Cout, kkc), lambda n, r: (0, 0))
    col_spec = pl.BlockSpec((Cout, 1), lambda n, r: (0, 0))
    tile_spec = pl.BlockSpec((1, Cout, m), lambda n, r: (n, 0, r))
    stats_spec = pl.BlockSpec((1, Cout, 3), lambda n, r: (n, 0, 0))

    scratch1 = [pltpu.VMEM((Cin, Hp, Wp), compute_dtype),
                pltpu.VMEM((kkc, th, Wo), compute_dtype)]

    vmem1 = _vmem_limit_bytes(
        [_lane_padded_bytes((1, Cin, H, W), x_nchw.dtype),
         _lane_padded_bytes((Cout, kkc), compute_dtype),
         _lane_padded_bytes((Cout, 1), jnp.float32),
         _lane_padded_bytes((1, Cout, m), stash_dtype),
         _lane_padded_bytes((1, Cout, 3), jnp.float32)],
        [_lane_padded_bytes((Cin, Hp, Wp), compute_dtype),
         _lane_padded_bytes((kkc, th, Wo), compute_dtype)])

    # ---- Pass 1: fused-pad conv (+bias), stash pre-BN activation, BN partials. ----
    stash, stats = pl.pallas_call(
        kern1,
        out_shape=(jax.ShapeDtypeStruct((N, Cout, Ho * Wo), stash_dtype),
                   jax.ShapeDtypeStruct((N, Cout, 3), jnp.float32)),
        grid=grid,
        in_specs=[x_spec, w_spec, col_spec],
        out_specs=(tile_spec, stats_spec),
        scratch_shapes=scratch1,
        compiler_params=pltpu.CompilerParams(
            dimension_semantics=("parallel", "arbitrary"),
            vmem_limit_bytes=vmem1),
    )(x_nchw, w_cm, b_col)

    # Tiny host-side fold of per-image partials -> per-channel scale/shift.
    # Exact within/between-tile variance decomposition (pass-1 M2 is tile-centered).
    count = jnp.float32(N * Ho * Wo)
    s1 = jnp.sum(stats[:, :, 0], axis=0)
    s2 = jnp.sum(stats[:, :, 1], axis=0)
    s3 = jnp.sum(stats[:, :, 2], axis=0)
    mean = s1 / count
    var = jnp.maximum((s2 + s3 - count * mean * mean) / count, 0.0)   # biased (PyTorch BN)
    inv_std = lax.rsqrt(var + EPS)
    g32 = gamma.astype(jnp.float32)
    scale = (g32 * inv_std).reshape(Cout, 1)
    shift = (beta.astype(jnp.float32) - mean * g32 * inv_std).reshape(Cout, 1)
    # TODO(synk): running_mean / running_var buffer updates (training-time side
    # effect) are not modeled; they do not affect this forward output.

    vmem2 = _vmem_limit_bytes(
        [_lane_padded_bytes((1, Cout, m), stash_dtype),
         2 * _lane_padded_bytes((Cout, 1), jnp.float32),
         _lane_padded_bytes((1, Cout, m), x_nchw.dtype)],
        [])

    # ---- Pass 2: pure elementwise folded BN + ReLU over the stash (lane-dense). ----
    out_flat = pl.pallas_call(
        _bn_relu_kernel,
        out_shape=jax.ShapeDtypeStruct((N, Cout, Ho * Wo), x_nchw.dtype),
        grid=grid,
        in_specs=[tile_spec, col_spec, col_spec],
        out_specs=tile_spec,
        compiler_params=pltpu.CompilerParams(
            dimension_semantics=("parallel", "parallel"),
            vmem_limit_bytes=vmem2),
    )(stash, scale, shift)

    # Free reshape (no transpose): the stash/output are already channel-major NCHW.
    return out_flat.reshape(N, Cout, Ho, Wo)


def _reference(x, w_oihw, b, gamma, beta, dilation):
    """Pure-JAX reference of the PyTorch module forward (training-mode BN)."""
    K = w_oihw.shape[-1]
    pad = (dilation * (K - 1) + 1) // 2
    xp = jnp.pad(x, ((0, 0), (0, 0), (pad, pad), (pad, pad)), mode="edge")
    y = lax.conv_general_dilated(
        xp, w_oihw, window_strides=(1, 1), padding="VALID",
        rhs_dilation=(dilation, dilation),
        dimension_numbers=("NCHW", "OIHW", "NCHW"))
    y = y + b.reshape(1, -1, 1, 1)
    mean = jnp.mean(y, axis=(0, 2, 3), keepdims=True)
    var = jnp.var(y, axis=(0, 2, 3), keepdims=True)
    yn = (y - mean) * lax.rsqrt(var + EPS)
    return jnp.maximum(yn * gamma.reshape(1, -1, 1, 1) + beta.reshape(1, -1, 1, 1), 0.0)


if __name__ == "__main__":
    in_channels, out_channels, kernel_size, dilation = 4, 8, 3, 1
    N, H, W = 2, 16, 16

    key = jax.random.PRNGKey(0)
    k_x, k_w, k_b, k_g, k_bt = jax.random.split(key, 5)

    x = jax.random.normal(k_x, (N, in_channels, H, W), jnp.float32)

    fan_in = in_channels * kernel_size * kernel_size
    bound = 1.0 / (fan_in ** 0.5)
    w_oihw = jax.random.uniform(
        k_w, (out_channels, in_channels, kernel_size, kernel_size),
        jnp.float32, -bound, bound)
    conv_bias = jax.random.uniform(k_b, (out_channels,), jnp.float32, -bound, bound)
    gamma = 1.0 + 0.1 * jax.random.normal(k_g, (out_channels,), jnp.float32)
    beta = 0.1 * jax.random.normal(k_bt, (out_channels,), jnp.float32)

    out = dense_cnn_block(x, w_oihw, conv_bias, gamma, beta, dilation=dilation)
    out = jax.block_until_ready(out)

    assert out.shape == (N, out_channels, H, W), out.shape
    assert bool(jnp.all(jnp.isfinite(out))), "non-finite output"

    ref = _reference(x, w_oihw, conv_bias, gamma, beta, dilation)
    max_err = float(jnp.max(jnp.abs(out - ref)))
    assert max_err < 5e-3, f"mismatch vs reference: {max_err}"
    print("KERNEL_OK")
</pallas_src>

<mosaic_0001>
module attributes {stable_mosaic.version = 11 : i64} {
  func.func @_conv_stats_kernel(%arg0: i32, %arg1: i32, %arg2: memref<1x4x16x16xf32, #tpu.memory_space<vmem>>, %arg3: memref<8x36xf32, #tpu.memory_space<vmem>>, %arg4: memref<8x1xf32, #tpu.memory_space<vmem>>, %arg5: memref<1x8x256xf32, #tpu.memory_space<vmem>>, %arg6: memref<1x8x3xf32, #tpu.memory_space<vmem>>, %arg7: memref<4x18x18xf32, #tpu.memory_space<vmem>>, %arg8: memref<36x16x16xf32, #tpu.memory_space<vmem>>) attributes {dimension_semantics = [#tpu.dimension_semantics<parallel>, #tpu.dimension_semantics<arbitrary>], iteration_bounds = array<i64: 2, 1>, scalar_prefetch = 0 : i64, scratch_operands = 2 : i64, tpu.core_type = #tpu.core_type<tc>, window_params = [{transform_indices = @transform_0, window_bounds = array<i64: 1, 4, 16, 16>}, {pipeline_mode = #tpu.pipeline_mode<synchronous>, transform_indices = @transform_1, window_bounds = array<i64: 8, 36>}, {pipeline_mode = #tpu.pipeline_mode<synchronous>, transform_indices = @transform_2, window_bounds = array<i64: 8, 1>}, {transform_indices = @transform_3, window_bounds = array<i64: 1, 8, 256>}, {transform_indices = @transform_4, window_bounds = array<i64: 1, 8, 3>}]} {
    %c0_i32 = arith.constant 0 : i32
    %0 = arith.cmpi eq, %arg1, %c0_i32 : i32
    %1 = arith.extui %0 : i1 to i32
    %c0_i32_0 = arith.constant 0 : i32
    %2 = arith.cmpi ne, %1, %c0_i32_0 : i32
    scf.if %2 {
      %cst_73 = arith.constant 0.000000e+00 : f32
      %79 = vector.broadcast %cst_73 : f32 to vector<1x8x3xf32>
      %c0_74 = arith.constant 0 : index
      %c0_75 = arith.constant 0 : index
      %c0_76 = arith.constant 0 : index
      %80 = vector.load %arg6[%c0_74, %c0_75, %c0_76] : memref<1x8x3xf32, #tpu.memory_space<vmem>>, vector<1x8x3xf32>
      tpu.vector_store %arg6[%c0_74, %c0_75, %c0_76], %79 {strides = array<i32>} : memref<1x8x3xf32, #tpu.memory_space<vmem>>, vector<1x8x3xf32>,
      %c0_77 = arith.constant 0 : index
      %c0_78 = arith.constant 0 : index
      %c0_79 = arith.constant 0 : index
      %c0_80 = arith.constant 0 : index
      %81 = vector.load %arg2[%c0_77, %c0_78, %c0_79, %c0_80] : memref<1x4x16x16xf32, #tpu.memory_space<vmem>>, vector<1x4x16x16xf32>
      %82 = vector.shape_cast %81 : vector<1x4x16x16xf32> to vector<4x16x16xf32>
      %c0_81 = arith.constant 0 : index
      %c1_82 = arith.constant 1 : index
      %c1_83 = arith.constant 1 : index
      %83 = vector.load %arg7[%c0_81, %c1_82, %c1_83] : memref<4x18x18xf32, #tpu.memory_space<vmem>>, vector<4x16x16xf32>
      tpu.vector_store %arg7[%c0_81, %c1_82, %c1_83], %82 {strides = array<i32>} : memref<4x18x18xf32, #tpu.memory_space<vmem>>, vector<4x16x16xf32>,
      %84 = vector.extract_strided_slice %82 {offsets = [0, 0, 0], sizes = [4, 1, 16], strides = [1, 1, 1]} : vector<4x16x16xf32> to vector<4x1x16xf32>
      %c0_84 = arith.constant 0 : index
      %c0_85 = arith.constant 0 : index
      %c1_86 = arith.constant 1 : index
      %85 = vector.load %arg7[%c0_84, %c0_85, %c1_86] : memref<4x18x18xf32, #tpu.memory_space<vmem>>, vector<4x1x16xf32>
      tpu.vector_store %arg7[%c0_84, %c0_85, %c1_86], %84 {strides = array<i32>} : memref<4x18x18xf32, #tpu.memory_space<vmem>>, vector<4x1x16xf32>,
      %86 = vector.extract_strided_slice %82 {offsets = [0, 15, 0], sizes = [4, 1, 16], strides = [1, 1, 1]} : vector<4x16x16xf32> to vector<4x1x16xf32>
      %c0_87 = arith.constant 0 : index
      %c17 = arith.constant 17 : index
      %c1_88 = arith.constant 1 : index
      %87 = vector.load %arg7[%c0_87, %c17, %c1_88] : memref<4x18x18xf32, #tpu.memory_space<vmem>>, vector<4x1x16xf32>
      tpu.vector_store %arg7[%c0_87, %c17, %c1_88], %86 {strides = array<i32>} : memref<4x18x18xf32, #tpu.memory_space<vmem>>, vector<4x1x16xf32>,
      %c0_89 = arith.constant 0 : index
      %c0_90 = arith.constant 0 : index
      %c1_91 = arith.constant 1 : index
      %88 = vector.load %arg7[%c0_89, %c0_90, %c1_91] : memref<4x18x18xf32, #tpu.memory_space<vmem>>, vector<4x18x1xf32>
      %c0_92 = arith.constant 0 : index
      %c0_93 = arith.constant 0 : index
      %c0_94 = arith.constant 0 : index
      %89 = vector.load %arg7[%c0_92, %c0_93, %c0_94] : memref<4x18x18xf32, #tpu.memory_space<vmem>>, vector<4x18x1xf32>
      tpu.vector_store %arg7[%c0_92, %c0_93, %c0_94], %88 {strides = array<i32>} : memref<4x18x18xf32, #tpu.memory_space<vmem>>, vector<4x18x1xf32>,
      %c0_95 = arith.constant 0 : index
      %c0_96 = arith.constant 0 : index
      %c16_97 = arith.constant 16 : index
      %90 = vector.load %arg7[%c0_95, %c0_96, %c16_97] : memref<4x18x18xf32, #tpu.memory_space<vmem>>, vector<4x18x1xf32>
      %c0_98 = arith.constant 0 : index
      %c0_99 = arith.constant 0 : index
      %c17_100 = arith.constant 17 : index
      %91 = vector.load %arg7[%c0_98, %c0_99, %c17_100] : memref<4x18x18xf32, #tpu.memory_space<vmem>>, vector<4x18x1xf32>
      tpu.vector_store %arg7[%c0_98, %c0_99, %c17_100], %90 {strides = array<i32>} : memref<4x18x18xf32, #tpu.memory_space<vmem>>, vector<4x18x1xf32>,
    } else {
    }
    %c16_i32 = arith.constant 16 : i32
    %3 = arith.muli %arg1, %c16_i32 : i32
    %4 = tpu.assume_multiple %3, 16 : i32
    %c0_i32_1 = arith.constant 0 : i32
    %5 = arith.addi %4, %c0_i32_1 : i32
    %c0 = arith.constant 0 : index
    %6 = arith.index_cast %5 : i32 to index
    %c0_2 = arith.constant 0 : index
    %7 = vector.load %arg7[%c0, %6, %c0_2] : memref<4x18x18xf32, #tpu.memory_space<vmem>>, vector<4x16x16xf32>
    %c0_3 = arith.constant 0 : index
    %c0_4 = arith.constant 0 : index
    %c0_5 = arith.constant 0 : index
    %8 = vector.load %arg8[%c0_3, %c0_4, %c0_5] : memref<36x16x16xf32, #tpu.memory_space<vmem>>, vector<4x16x16xf32>
    tpu.vector_store %arg8[%c0_3, %c0_4, %c0_5], %7 {strides = array<i32>} : memref<36x16x16xf32, #tpu.memory_space<vmem>>, vector<4x16x16xf32>,
    %c0_i32_6 = arith.constant 0 : i32
    %9 = arith.addi %4, %c0_i32_6 : i32
    %c0_7 = arith.constant 0 : index
    %10 = arith.index_cast %9 : i32 to index
    %c1 = arith.constant 1 : index
    %11 = vector.load %arg7[%c0_7, %10, %c1] : memref<4x18x18xf32, #tpu.memory_space<vmem>>, vector<4x16x16xf32>
    %c4 = arith.constant 4 : index
    %c0_8 = arith.constant 0 : index
    %c0_9 = arith.constant 0 : index
    %12 = vector.load %arg8[%c4, %c0_8, %c0_9] : memref<36x16x16xf32, #tpu.memory_space<vmem>>, vector<4x16x16xf32>
    tpu.vector_store %arg8[%c4, %c0_8, %c0_9], %11 {strides = array<i32>} : memref<36x16x16xf32, #tpu.memory_space<vmem>>, vector<4x16x16xf32>,
    %c0_i32_10 = arith.constant 0 : i32
    %13 = arith.addi %4, %c0_i32_10 : i32
    %c0_11 = arith.constant 0 : index
    %14 = arith.index_cast %13 : i32 to index
    %c2 = arith.constant 2 : index
    %15 = vector.load %arg7[%c0_11, %14, %c2] : memref<4x18x18xf32, #tpu.memory_space<vmem>>, vector<4x16x16xf32>
    %c8 = arith.constant 8 : index
    %c0_12 = arith.constant 0 : index
    %c0_13 = arith.constant 0 : index
    %16 = vector.load %arg8[%c8, %c0_12, %c0_13] : memref<36x16x16xf32, #tpu.memory_space<vmem>>, vector<4x16x16xf32>
    tpu.vector_store %arg8[%c8, %c0_12, %c0_13], %15 {strides = array<i32>} : memref<36x16x16xf32, #tpu.memory_space<vmem>>, vector<4x16x16xf32>,
    %c1_i32 = arith.constant 1 : i32
    %17 = arith.addi %4, %c1_i32 : i32
    %c0_14 = arith.constant 0 : index
    %18 = arith.index_cast %17 : i32 to index
    %c0_15 = arith.constant 0 : index
    %19 = vector.load %arg7[%c0_14, %18, %c0_15] : memref<4x18x18xf32, #tpu.memory_space<vmem>>, vector<4x16x16xf32>
    %c12 = arith.constant 12 : index
    %c0_16 = arith.constant 0 : index
    %c0_17 = arith.constant 0 : index
    %20 = vector.load %arg8[%c12, %c0_16, %c0_17] : memref<36x16x16xf32, #tpu.memory_space<vmem>>, vector<4x16x16xf32>
    tpu.vector_store %arg8[%c12, %c0_16, %c0_17], %19 {strides = array<i32>} : memref<36x16x16xf32, #tpu.memory_space<vmem>>, vector<4x16x16xf32>,
    %c1_i32_18 = arith.constant 1 : i32
    %21 = arith.addi %4, %c1_i32_18 : i32
    %c0_19 = arith.constant 0 : index
    %22 = arith.index_cast %21 : i32 to index
    %c1_20 = arith.constant 1 : index
    %23 = vector.load %arg7[%c0_19, %22, %c1_20] : memref<4x18x18xf32, #tpu.memory_space<vmem>>, vector<4x16x16xf32>
    %c16 = arith.constant 16 : index
    %c0_21 = arith.constant 0 : index
    %c0_22 = arith.constant 0 : index
    %24 = vector.load %arg8[%c16, %c0_21, %c0_22] : memref<36x16x16xf32, #tpu.memory_space<vmem>>, vector<4x16x16xf32>
    tpu.vector_store %arg8[%c16, %c0_21, %c0_22], %23 {strides = array<i32>} : memref<36x16x16xf32, #tpu.memory_space<vmem>>, vector<4x16x16xf32>,
    %c1_i32_23 = arith.constant 1 : i32
    %25 = arith.addi %4, %c1_i32_23 : i32
    %c0_24 = arith.constant 0 : index
    %26 = arith.index_cast %25 : i32 to index
    %c2_25 = arith.constant 2 : index
    %27 = vector.load %arg7[%c0_24, %26, %c2_25] : memref<4x18x18xf32, #tpu.memory_space<vmem>>, vector<4x16x16xf32>
    %c20 = arith.constant 20 : index
    %c0_26 = arith.constant 0 : index
    %c0_27 = arith.constant 0 : index
    %28 = vector.load %arg8[%c20, %c0_26, %c0_27] : memref<36x16x16xf32, #tpu.memory_space<vmem>>, vector<4x16x16xf32>
    tpu.vector_store %arg8[%c20, %c0_26, %c0_27], %27 {strides = array<i32>} : memref<36x16x16xf32, #tpu.memory_space<vmem>>, vector<4x16x16xf32>,
    %c2_i32 = arith.constant 2 : i32
    %29 = arith.addi %4, %c2_i32 : i32
    %c0_28 = arith.constant 0 : index
    %30 = arith.index_cast %29 : i32 to index
    %c0_29 = arith.constant 0 : index
    %31 = vector.load %arg7[%c0_28, %30, %c0_29] : memref<4x18x18xf32, #tpu.memory_space<vmem>>, vector<4x16x16xf32>
    %c24 = arith.constant 24 : index
    %c0_30 = arith.constant 0 : index
    %c0_31 = arith.constant 0 : index
    %32 = vector.load %arg8[%c24, %c0_30, %c0_31] : memref<36x16x16xf32, #tpu.memory_space<vmem>>, vector<4x16x16xf32>
    tpu.vector_store %arg8[%c24, %c0_30, %c0_31], %31 {strides = array<i32>} : memref<36x16x16xf32, #tpu.memory_space<vmem>>, vector<4x16x16xf32>,
    %c2_i32_32 = arith.constant 2 : i32
    %33 = arith.addi %4, %c2_i32_32 : i32
    %c0_33 = arith.constant 0 : index
    %34 = arith.index_cast %33 : i32 to index
    %c1_34 = arith.constant 1 : index
    %35 = vector.load %arg7[%c0_33, %34, %c1_34] : memref<4x18x18xf32, #tpu.memory_space<vmem>>, vector<4x16x16xf32>
    %c28 = arith.constant 28 : index
    %c0_35 = arith.constant 0 : index
    %c0_36 = arith.constant 0 : index
    %36 = vector.load %arg8[%c28, %c0_35, %c0_36] : memref<36x16x16xf32, #tpu.memory_space<vmem>>, vector<4x16x16xf32>
    tpu.vector_store %arg8[%c28, %c0_35, %c0_36], %35 {strides = array<i32>} : memref<36x16x16xf32, #tpu.memory_space<vmem>>, vector<4x16x16xf32>,
    %c2_i32_37 = arith.constant 2 : i32
    %37 = arith.addi %4, %c2_i32_37 : i32
    %c0_38 = arith.constant 0 : index
    %38 = arith.index_cast %37 : i32 to index
    %c2_39 = arith.constant 2 : index
    %39 = vector.load %arg7[%c0_38, %38, %c2_39] : memref<4x18x18xf32, #tpu.memory_space<vmem>>, vector<4x16x16xf32>
    %c32 = arith.constant 32 : index
    %c0_40 = arith.constant 0 : index
    %c0_41 = arith.constant 0 : index
    %40 = vector.load %arg8[%c32, %c0_40, %c0_41] : memref<36x16x16xf32, #tpu.memory_space<vmem>>, vector<4x16x16xf32>
    tpu.vector_store %arg8[%c32, %c0_40, %c0_41], %39 {strides = array<i32>} : memref<36x16x16xf32, #tpu.memory_space<vmem>>, vector<4x16x16xf32>,
    %c0_42 = arith.constant 0 : index
    %c0_43 = arith.constant 0 : index
    %41 = vector.load %arg3[%c0_42, %c0_43] : memref<8x36xf32, #tpu.memory_space<vmem>>, vector<8x36xf32>
    %c0_44 = arith.constant 0 : index
    %c0_45 = arith.constant 0 : index
    %c0_46 = arith.constant 0 : index
    %42 = vector.load %arg8[%c0_44, %c0_45, %c0_46] : memref<36x16x16xf32, #tpu.memory_space<vmem>>, vector<36x16x16xf32>
    %43 = vector.shape_cast %42 : vector<36x16x16xf32> to vector<36x256xf32>
    %cst = arith.constant dense<0.000000e+00> : vector<8x256xf32>
    %44 = tpu.matmul %41, %43, %cst {dimension_numbers = #tpu.dot_dimension_numbers<[1], [0], [0], [1], [0, 0, 1, 1], [], []>} : vector<8x36xf32>, vector<36x256xf32>, vector<8x256xf32> -> vector<8x256xf32>
    %c0_47 = arith.constant 0 : index
    %c0_48 = arith.constant 0 : index
    %45 = vector.load %arg4[%c0_47, %c0_48] : memref<8x1xf32, #tpu.memory_space<vmem>>, vector<8x1xf32>
    %46 = vector.broadcast %45 : vector<8x1xf32> to vector<8x256xf32>
    %47 = arith.addf %44, %46 : vector<8x256xf32>
    %c0_49 = arith.constant 0 : index
    %c0_50 = arith.constant 0 : index
    %c0_51 = arith.constant 0 : index
    %48 = vector.load %arg5[%c0_49, %c0_50, %c0_51] : memref<1x8x256xf32, #tpu.memory_space<vmem>>, vector<1x8x256xf32>
    %49 = vector.shape_cast %48 : vector<1x8x256xf32> to vector<8x256xf32>
    %50 = vector.shape_cast %47 : vector<8x256xf32> to vector<1x8x256xf32>
    tpu.vector_store %arg5[%c0_49, %c0_50, %c0_51], %50 {strides = array<i32>} : memref<1x8x256xf32, #tpu.memory_space<vmem>>, vector<1x8x256xf32>,
    %cst_52 = arith.constant dense<0.000000e+00> : vector<8xf32>
    %51 = vector.multi_reduction <add>, %47, %cst_52 [1] : vector<8x256xf32> to vector<8xf32>
    %52 = vector.shape_cast %51 : vector<8xf32> to vector<8x1xf32>
    %cst_53 = arith.constant 3.906250e-03 : f32
    %53 = vector.broadcast %cst_53 : f32 to vector<8x1xf32>
    %54 = arith.mulf %52, %53 : vector<8x1xf32>
    %55 = vector.broadcast %54 : vector<8x1xf32> to vector<8x256xf32>
    %56 = arith.subf %47, %55 : vector<8x256xf32>
    %57 = arith.mulf %56, %56 : vector<8x256xf32>
    %cst_54 = arith.constant dense<0.000000e+00> : vector<8xf32>
    %58 = vector.multi_reduction <add>, %57, %cst_54 [1] : vector<8x256xf32> to vector<8xf32>
    %59 = vector.shape_cast %58 : vector<8xf32> to vector<8x1xf32>
    %c0_55 = arith.constant 0 : index
    %c0_56 = arith.constant 0 : index
    %c0_57 = arith.constant 0 : index
    %60 = vector.load %arg6[%c0_55, %c0_56, %c0_57] : memref<1x8x3xf32, #tpu.memory_space<vmem>>, vector<1x8x1xf32>
    %61 = vector.shape_cast %60 : vector<1x8x1xf32> to vector<8x1xf32>
    %62 = arith.addf %61, %52 : vector<8x1xf32>
    %c0_58 = arith.constant 0 : index
    %c0_59 = arith.constant 0 : index
    %c0_60 = arith.constant 0 : index
    %63 = vector.load %arg6[%c0_58, %c0_59, %c0_60] : memref<1x8x3xf32, #tpu.memory_space<vmem>>, vector<1x8x1xf32>
    %64 = vector.shape_cast %63 : vector<1x8x1xf32> to vector<8x1xf32>
    %65 = vector.shape_cast %62 : vector<8x1xf32> to vector<1x8x1xf32>
    tpu.vector_store %arg6[%c0_58, %c0_59, %c0_60], %65 {strides = array<i32>} : memref<1x8x3xf32, #tpu.memory_space<vmem>>, vector<1x8x1xf32>,
    %c0_61 = arith.constant 0 : index
    %c0_62 = arith.constant 0 : index
    %c1_63 = arith.constant 1 : index
    %66 = vector.load %arg6[%c0_61, %c0_62, %c1_63] : memref<1x8x3xf32, #tpu.memory_space<vmem>>, vector<1x8x1xf32>
    %67 = vector.shape_cast %66 : vector<1x8x1xf32> to vector<8x1xf32>
    %68 = arith.addf %67, %59 : vector<8x1xf32>
    %c0_64 = arith.constant 0 : index
    %c0_65 = arith.constant 0 : index
    %c1_66 = arith.constant 1 : index
    %69 = vector.load %arg6[%c0_64, %c0_65, %c1_66] : memref<1x8x3xf32, #tpu.memory_space<vmem>>, vector<1x8x1xf32>
    %70 = vector.shape_cast %69 : vector<1x8x1xf32> to vector<8x1xf32>
    %71 = vector.shape_cast %68 : vector<8x1xf32> to vector<1x8x1xf32>
    tpu.vector_store %arg6[%c0_64, %c0_65, %c1_66], %71 {strides = array<i32>} : memref<1x8x3xf32, #tpu.memory_space<vmem>>, vector<1x8x1xf32>,
    %c0_67 = arith.constant 0 : index
    %c0_68 = arith.constant 0 : index
    %c2_69 = arith.constant 2 : index
    %72 = vector.load %arg6[%c0_67, %c0_68, %c2_69] : memref<1x8x3xf32, #tpu.memory_space<vmem>>, vector<1x8x1xf32>
    %73 = vector.shape_cast %72 : vector<1x8x1xf32> to vector<8x1xf32>
    %74 = arith.mulf %54, %52 : vector<8x1xf32>
    %75 = arith.addf %73, %74 : vector<8x1xf32>
    %c0_70 = arith.constant 0 : index
    %c0_71 = arith.constant 0 : index
    %c2_72 = arith.constant 2 : index
    %76 = vector.load %arg6[%c0_70, %c0_71, %c2_72] : memref<1x8x3xf32, #tpu.memory_space<vmem>>, vector<1x8x1xf32>
    %77 = vector.shape_cast %76 : vector<1x8x1xf32> to vector<8x1xf32>
    %78 = vector.shape_cast %75 : vector<8x1xf32> to vector<1x8x1xf32>
    tpu.vector_store %arg6[%c0_70, %c0_71, %c2_72], %78 {strides = array<i32>} : memref<1x8x3xf32, #tpu.memory_space<vmem>>, vector<1x8x1xf32>,
    return
  }
  func.func @transform_0(%arg0: i32, %arg1: i32) -> (i32, i32, i32, i32) {
    %c0_i32 = arith.constant 0 : i32
    %c0_i32_0 = arith.constant 0 : i32
    %c0_i32_1 = arith.constant 0 : i32
    %c0_i32_2 = arith.constant 0 : i32
    return %arg0, %c0_i32, %c0_i32_0, %c0_i32_1 : i32, i32, i32, i32
  }
  func.func @transform_1(%arg0: i32, %arg1: i32) -> (i32, i32) {
    %c0_i32 = arith.constant 0 : i32
    %c0_i32_0 = arith.constant 0 : i32
    %c0_i32_1 = arith.constant 0 : i32
    return %c0_i32, %c0_i32_0 : i32, i32
  }
  func.func @transform_2(%arg0: i32, %arg1: i32) -> (i32, i32) {
    %c0_i32 = arith.constant 0 : i32
    %c0_i32_0 = arith.constant 0 : i32
    %c0_i32_1 = arith.constant 0 : i32
    return %c0_i32, %c0_i32_0 : i32, i32
  }
  func.func @transform_3(%arg0: i32, %arg1: i32) -> (i32, i32, i32) {
    %c0_i32 = arith.constant 0 : i32
    %c0_i32_0 = arith.constant 0 : i32
    return %arg0, %c0_i32, %arg1 : i32, i32, i32
  }
  func.func @transform_4(%arg0: i32, %arg1: i32) -> (i32, i32, i32) {
    %c0_i32 = arith.constant 0 : i32
    %c0_i32_0 = arith.constant 0 : i32
    %c0_i32_1 = arith.constant 0 : i32
    return %arg0, %c0_i32, %c0_i32_0 : i32, i32, i32
  }
}

</mosaic_0001>

<bundles_post_ra>
// kernel: tpu_custom_call.1
= control target key start
LH: loop header
LB: loop body
LE: loop exit
PB: predicated region body
PF: predicated region fallthrough
CT: control target
= control target key end

     0   :  { %10 = vsyncpa [#allocation5], 0  ;;  %s4456_s0 = inlined_call_operand.hbm [shape: f32[2,4,16,16], index: 0, kind: input, shape index: {}]   ;;  %s4457_s1 = inlined_call_operand.vmem [shape: f32[8,36], index: 1, kind: input, shape index: {}]   ;;  %s4458_s2 = inlined_call_operand.vmem [shape: f32[8,1], index: 2, kind: input, shape index: {}]   ;;  %s4459_s3 = inlined_call_operand.hbm [shape: f32[2,8,256], index: 3, kind: output, shape index: {0}]   ;;  %s4460_s4 = inlined_call_operand.vmem [shape: f32[2,8,3], index: 4, kind: output, shape index: {1}]  }
   0x1   :  { %12 = vsyncpa [#allocation5 + $0x1], 0 }
   0x2   :  { %13 = vsyncpa [#allocation6], 0 }
   0x3   :  { %15 = vsyncpa [#allocation6 + $0x1], 0  ;;  %s2913_s15 = smov 0   ;;  %s2915_s16 = smov 0  }
   0x4   :  { %s2917_s17 = smov 0   ;;  %s2919_s18 = smov 0  }
   0x5   :  { %s2921_s19 = smov 0   ;;  %s2923_s20 = smov 0  }
   0x6 LB: > { %s2468_s21 = sadd.s32 4294967295, %s2870_s20   ;;  %s2469_s22 = sadd.s32 4294967294, %s2870_s20   ;;  %s2870_s20 = sphi %s2923_s20, %s21_s20   ;;  %s2866_s19 = sphi %s2921_s19, %s4571_s19   ;;  %s2862_s18 = sphi %s2919_s18, %s4570_s18   ;;  %s2858_s17 = sphi %s2917_s17, %s4569_s17   ;;  %s2854_s16 = sphi %s2915_s16, %s4568_s16   ;;  %s2850_s15 = sphi %s2913_s15, %s4567_s15  }
   0x7   : > { %s33_s23 = sadd.s32 1, %s2866_s19  ;;  %s40_s24 = sadd.s32 1, %s2858_s17 }
   0x8   : > { %p35_p0 = scmp.ge.s32.totalorder %s33_s23, 2  ;;  %p47_p1 = scmp.ne.s32.totalorder %s2858_s17, %s2854_s16 }
   0x9   : > { %p48_p2 = scmp.eq.s32.totalorder %s2870_s20, 0  ;;  %p53_p3 = scmp.ne.s32.totalorder %s2854_s16, %s2850_s15 }
   0xa   : > { %s4573_s23 = smov (%p35_p0, %s33_s23), 0  ;;  %p54_p5 = scmp.eq.s32.totalorder %s2468_s21, 0 }
   0xb   : > { %p2954_p4 = por %p48_p2, %p47_p1  ;;  %s37_s26 = ssub.s32 %s2866_s19, %s4573_s23 }
   0xc   : > { %p121_p6 = scmp.eq.s32.totalorder %s2468_s21, 1  ;;  %p38_p7 = scmp.eq.s32.totalorder %s37_s26, 0 }
   0xd   : > { %p2960_p8 = por %p54_p5, %p53_p3  ;;  %p127_p10 = scmp.eq.s32.totalorder %s2469_s22, 1 }
   0xe   : > { %p2964_p9 = por %p121_p6, %p47_p1  ;;  %p2471_p12 = scmp.ge.s32.totalorder %s2870_s20, 2 }
   0xf   : > { %s2969_s29 = scalar_select %p38_p7, %s2858_s17, %s40_s24  }
  0x10   : > { %p2971_p11 = por %p127_p10, %p53_p3  ;;  %p2550_p13 = scmp.lt.s32.totalorder %s2870_s20, 2 }
  0x11   : > { %s179_s5 = sand.u32 1, %s2858_s17   ;;  %s2536_s7 = sshll.u32 %s2866_s19, 6 }
  0x12   : > { %s2472_s6 = sshll.u32 %s179_s5, 6  ;;  %s188_s10 = scalar_lea.hbm %s4456_s0, %s2536_s7 }
  0x13   : > { %s183_s11 = scalar_lea.vmem [#allocation4], %s2472_s6  ;;  %s189_s13 = sshll.u32 %s188_s10, 4  ;;  %s190_s13 = int_to_ptr.hbm [resolvable:$true] %s189_s13 }
  0x14   : > { %s191_s12 = sshll.u32 %s183_s11, 4  ;;  %p2543_p0 = pnand %p2550_p13, %p2954_p4  ;;  %s192_s12 = int_to_ptr.vmem [resolvable:$true] %s191_s12 }
  0x15   : > { %p2475_p1 = scmp.ge.s32.totalorder %s2870_s20, 1  ;;  %s180_s14 = scalar_lea.sflag [#allocation5], %s179_s5 }
  0x16   : > { %s2872_s21 = smov 128   ;;  %s2873_s22 = smov 8  }
  0x17   : > { %2545 = dma.hbm_to_vmem [thread:$0]  (!%p2543_p0), %s190_s13, 1024, %s192_s12, %s180_s14, %s2872_s21, %s2872_s21, %s2873_s22  }
  0x18   : > { %p199_p2 = scmp.lt.s32.totalorder %s2870_s20, 3 }
  0x1a   : > { %p200_p3 = pnand %p2475_p1, %p199_p2 }
  0x1c   : > { %203 = sbr.rel (%p200_p3) target bundleno = 1285 (0x505), region = 32 }
  0x21   : > { %s2987_s24 = sand.u32 1, %s2854_s16  }
  0x22   : > { %s2476_s26 = sshll.u32 %s2987_s24, 6  ;;  %s206_s6 = scalar_lea.sflag [#allocation5], %s2987_s24 }
  0x23   : > { %s209_s7 = scalar_lea.vmem [#allocation4], %s2476_s26 }
  0x24   : > { %2841 = dma.done.wait (%p2960_p8), %s206_s6, 1024  }
  0x25   : > { %2843 = vsyncadd (%p2960_p8), %s206_s6, 4294966272  ;;  %v256_v0 = vld [vmem:[%s209_s7 + $0x30] sm:$0xff]  ;;  %s2874_s25 = smov 1   ;;  %v254_v2 = vld [vmem:[%s209_s7 + $0x20] sm:$0xff]  ;;  %vm290_vm0 = vcmask 138248   ;;  %vm299_vm1 = vcmask 131080  }
  0x26   : > { %v252_v1 = vld [vmem:[%s209_s7 + $0x10] sm:$0xff]  ;;  %278 = vrot.lane.b32.xlu0 %v256_v0, %s2874_s25  ;;  %274 = vrot.lane.b32.xlu2 %v254_v2, %s2874_s25  ;;  %v257_v3 = vld [vmem:[%s209_s7 + $0x38] sm:$0xff]  ;;  %vm304_vm2 = vcmask 138255   ;;  %s2875_s27 = smov 127   ;;  %vm369_vm3 = vcmask 7168   ;;  %vm372_vm4 = vcmask 1024  }
  0x27   : > { %270 = vrot.lane.b32.xlu1 %v252_v1, %s2874_s25  ;;  %v253_v4 = vld [vmem:[%s209_s7 + $0x18] sm:$0xff]  ;;  %v255_v5 = vld [vmem:[%s209_s7 + $0x28] sm:$0xff]  ;;  %v250_v7 = vld [vmem:[%s209_s7] sm:$0xff]  ;;  %vm443_vm5 = vcmask 146568   ;;  %vm467_vm6 = vcmask 130048   ;;  %vm446_vm7 = vcmask 140424  }
  0x28   : > { %v251_v6 = vld [vmem:[%s209_s7 + $0x8] sm:$0xff]  ;;  %vm882_vm8 = vcmask 1047556   ;;  %s2877_s5 = smov 126   ;;  %s2879_s8 = smov 32   ;;  %vm2181_vm9 = vcmask 392192   ;;  %vm2175_vm10 = vcmask 261120  }
  0x29   : > { %s2880_s9 = smov 64   ;;  %s2881_s10 = smov 48   ;;  %vm2187_vm11 = vcmask 523264   ;;  %vm2193_vm12 = vcmask 654336   ;;  %vm2199_vm13 = vcmask 785408   ;;  %vm2205_vm14 = vcmask 916480  }
  0x2a   : > { %s2882_s11 = smov 16   ;;  %s2883_s12 = smov 96   ;;  %vm2256_vm15 = vcmask 1043456  }
  0x2b   : > { %s2884_s13 = smov 80   ;;  %s2885_s14 = smov 112  }
  0x2c   : > { %p240_p4 = scmp.lt.s32.totalorder %s2862_s18, 1  ;;  %s2330_s26 = scalar_lea.sflag [#allocation6], %s2987_s24 }
  0x2e   : > { %280 = vrot.lane.b32.xlu0 %v257_v3, %s2874_s25  ;;  %276 = vrot.lane.b32.xlu2 %v255_v5, %s2874_s25  ;;  %s241_s7 = scalar_select %p240_p4, %s2862_s18, 1 }
  0x2f   : > { %272 = vrot.lane.b32.xlu1 %v253_v4, %s2874_s25 }
  0x36   : > { %266 = vrot.lane.b32.xlu0 %v250_v7, %s2874_s25 }
  0x37   : > { %268 = vrot.lane.b32.xlu1 %v251_v6, %s2874_s25 }
  0x80   : > { %v275_v8 = vpop.permute.xlu2 %274 }
  0x81   : > { %295 = vst.msk [vmem:[#allocation2 + $0x31] sm:$0xff] %vm290_vm0, %v275_v8 }
  0x82   : > { %302 = vst.msk [vmem:[#allocation2 + $0x30] sm:$0x1] %vm299_vm1, %v275_v8 }
  0x88   : > { %v277_v11 = vpop.permute.xlu2 %276 }
  0x89   : > { %296 = vst.msk [vmem:[#allocation2 + $0x39] sm:$0xff] %vm290_vm0, %v277_v11  ;;  %v315_v27 = vld [vmem:[#allocation2 + $0x30] sm:$0xff] }
  0x8a   : > { %307 = vst.msk [vmem:[#allocation2 + $0x3a] sm:$0x80] %vm304_vm2, %v277_v11 }
  0x90   : > { %v316_v26 = vld [vmem:[#allocation2 + $0x38] sm:$0xff] }
  0x91   : > { %v317_v25 = vld [vmem:[#allocation2 + $0x40] sm:$0x3] }
  0x98   : > { %v279_v9 = vpop.permute.xlu0 %278 }
  0x99   : > { %v271_v10 = vpop.permute.xlu1 %270  ;;  %297 = vst.msk [vmem:[#allocation2 + $0x49] sm:$0xff] %vm290_vm0, %v279_v9 }
  0x9a   : > { %303 = vst.msk [vmem:[#allocation2 + $0x48] sm:$0x1] %vm299_vm1, %v279_v9 }
  0x9b   : > { %293 = vst.msk [vmem:[#allocation2 + $0x19] sm:$0xff] %vm290_vm0, %v271_v10 }
  0x9c   : > { %301 = vst.msk [vmem:[#allocation2 + $0x18] sm:$0x1] %vm299_vm1, %v271_v10 }
  0xa0   : > { %v281_v12 = vpop.permute.xlu0 %280 }
  0xa1   : > { %v273_v13 = vpop.permute.xlu1 %272  ;;  %298 = vst.msk [vmem:[#allocation2 + $0x51] sm:$0xff] %vm290_vm0, %v281_v12  ;;  %v318_v20 = vld [vmem:[#allocation2 + $0x48] sm:$0xff] }
  0xa2   : > { %308 = vst.msk [vmem:[#allocation2 + $0x52] sm:$0x80] %vm304_vm2, %v281_v12 }
  0xa3   : > { %294 = vst.msk [vmem:[#allocation2 + $0x21] sm:$0xff] %vm290_vm0, %v273_v13  ;;  %v312_v21 = vld [vmem:[#allocation2 + $0x18] sm:$0xff] }
  0xa4   : > { %306 = vst.msk [vmem:[#allocation2 + $0x22] sm:$0x80] %vm304_vm2, %v273_v13 }
  0xa8   : > { %v267_v15 = vpop.permute.xlu0 %266  ;;  %v319_v19 = vld [vmem:[#allocation2 + $0x50] sm:$0xff] }
  0xa9   : > { %v269_v14 = vpop.permute.xlu1 %268  ;;  %291 = vst.msk [vmem:[#allocation2 + $0x1] sm:$0xff] %vm290_vm0, %v267_v15  ;;  %v320_v24 = vld [vmem:[#allocation2 + $0x58] sm:$0x3] }
  0xaa   : > { %292 = vst.msk [vmem:[#allocation2 + $0x9] sm:$0xff] %vm290_vm0, %v269_v14  ;;  %v313_v23 = vld [vmem:[#allocation2 + $0x20] sm:$0xff]  ;;  %vm2252_vm0 = vcmask 293888  }
  0xab   : > { %305 = vst.msk [vmem:[#allocation2 + $0xa] sm:$0x80] %vm304_vm2, %v269_v14  ;;  %v314_v22 = vld [vmem:[#allocation2 + $0x28] sm:$0x3] }
  0xac   : > { %300 = vst.msk [vmem:[#allocation2] sm:$0x1] %vm299_vm1, %v267_v15  ;;  %vm248_vm1 = vcmask 23552  }
  0xb1   : > { %v310_v17 = vld [vmem:[#allocation2 + $0x8] sm:$0xff] }
  0xb2   : > { %v311_v16 = vld [vmem:[#allocation2 + $0x10] sm:$0x3]  ;;  %335 = vrot.lane.b32.xlu0 %v310_v17, %s2875_s27 }
  0xb3   : > { %337 = vrot.lane.b32.xlu1 %v311_v16, %s2875_s27  ;;  %v309_v18 = vld [vmem:[#allocation2] sm:$0xff] }
  0xb4   : > { %333 = vrot.lane.b32.xlu2 %v309_v18, %s2875_s27 }
  0xba   : > { %351 = vrot.lane.b32.xlu0 %v318_v20, %s2875_s27 }
  0xbb   : > { %353 = vrot.lane.b32.xlu1 %v319_v19, %s2875_s27 }
  0xbc   : > { %339 = vrot.lane.b32.xlu2 %v312_v21, %s2875_s27  ;;  %v2876_v21 = vmov 1983009808  }
  0xc2   : > { %341 = vrot.lane.b32.xlu0 %v313_v23, %s2875_s27 }
  0xc3   : > { %343 = vrot.lane.b32.xlu1 %v314_v22, %s2875_s27  ;;  %v887_v22 = vunpack.c.l.s4 %v2876_v21  ;;  %v2878_v21 = vmov 1934713408  }
  0xc4   : > { %355 = vrot.lane.b32.xlu2 %v320_v24, %s2875_s27 }
  0xca   : > { %347 = vrot.lane.b32.xlu0 %v316_v26, %s2875_s27 }
  0xcb   : > { %349 = vrot.lane.b32.xlu1 %v317_v25, %s2875_s27 }
  0xcc   : > { %345 = vrot.lane.b32.xlu2 %v315_v27, %s2875_s27 }
 0x10e   : > { %v334_v28 = vpop.permute.xlu2 %333 }
 0x10f   : > { %370 = vst.msk [vmem:[#allocation2] sm:$0xff] %vm369_vm3, %v334_v28  ;;  %v3164_v28 = vunpack.c.0.s8 %v887_v22  ;;  %v935_v22 = vunpack.c.l.s4 %v2878_v21 }
 0x116   : > { %v340_v29 = vpop.permute.xlu2 %339  ;;  %v383_v30 = vld [vmem:[#allocation2] sm:$0xff] }
 0x117   : > { %374 = vst.msk [vmem:[#allocation2 + $0x18] sm:$0xff] %vm369_vm3, %v340_v29  ;;  %407 = vrot.lane.b32.xlu2 %v383_v30, %s2874_s25 }
 0x11e   : > { %v356_v31 = vpop.permute.xlu2 %355  ;;  %v386_v32 = vld [vmem:[#allocation2 + $0x18] sm:$0xff] }
 0x11f   : > { %382 = vst.msk [vmem:[#allocation2 + $0x58] sm:$0x3] %vm372_vm4, %v356_v31  ;;  %413 = vrot.lane.b32.xlu2 %v386_v32, %s2874_s25 }
 0x124   : > { %v336_v34 = vpop.permute.xlu0 %335 }
 0x125   : > { %v338_v33 = vpop.permute.xlu1 %337  ;;  %371 = vst.msk [vmem:[#allocation2 + $0x8] sm:$0xff] %vm369_vm3, %v336_v34 }
 0x126   : > { %373 = vst.msk [vmem:[#allocation2 + $0x10] sm:$0x3] %vm372_vm4, %v338_v33  ;;  %v346_v35 = vpop.permute.xlu2 %345  ;;  %v394_v43 = vld [vmem:[#allocation2 + $0x58] sm:$0x3] }
 0x127   : > { %377 = vst.msk [vmem:[#allocation2 + $0x30] sm:$0xff] %vm369_vm3, %v346_v35 }
 0x12c   : > { %v352_v38 = vpop.permute.xlu0 %351  ;;  %v384_v39 = vld [vmem:[#allocation2 + $0x8] sm:$0xff] }
 0x12d   : > { %v354_v36 = vpop.permute.xlu1 %353  ;;  %v385_v37 = vld [vmem:[#allocation2 + $0x10] sm:$0x3]  ;;  %380 = vst.msk [vmem:[#allocation2 + $0x48] sm:$0xff] %vm369_vm3, %v352_v38  ;;  %409 = vrot.lane.b32.xlu0 %v384_v39, %s2874_s25 }
 0x12e   : > { %381 = vst.msk [vmem:[#allocation2 + $0x50] sm:$0xff] %vm369_vm3, %v354_v36  ;;  %411 = vrot.lane.b32.xlu1 %v385_v37, %s2874_s25  ;;  %v389_v40 = vld [vmem:[#allocation2 + $0x30] sm:$0xff] }
 0x12f   : > { %419 = vrot.lane.b32.xlu2 %v389_v40, %s2874_s25 }
 0x134   : > { %v342_v42 = vpop.permute.xlu0 %341  ;;  %v392_v49 = vld [vmem:[#allocation2 + $0x48] sm:$0xff] }
 0x135   : > { %v344_v41 = vpop.permute.xlu1 %343  ;;  %375 = vst.msk [vmem:[#allocation2 + $0x20] sm:$0xff] %vm369_vm3, %v342_v42  ;;  %v393_v48 = vld [vmem:[#allocation2 + $0x50] sm:$0xff] }
 0x136   : > { %376 = vst.msk [vmem:[#allocation2 + $0x28] sm:$0x3] %vm372_vm4, %v344_v41 }
 0x137   : > { %429 = vrot.lane.b32.xlu2 %v394_v43, %s2874_s25 }
 0x13c   : > { %v348_v46 = vpop.permute.xlu0 %347  ;;  %v387_v47 = vld [vmem:[#allocation2 + $0x20] sm:$0xff] }
 0x13d   : > { %v388_v44 = vld [vmem:[#allocation2 + $0x28] sm:$0x3]  ;;  %v350_v45 = vpop.permute.xlu1 %349  ;;  %378 = vst.msk [vmem:[#allocation2 + $0x38] sm:$0xff] %vm369_vm3, %v348_v46  ;;  %415 = vrot.lane.b32.xlu0 %v387_v47, %s2874_s25 }
 0x13e   : > { %417 = vrot.lane.b32.xlu1 %v388_v44, %s2874_s25  ;;  %379 = vst.msk [vmem:[#allocation2 + $0x40] sm:$0x3] %vm372_vm4, %v350_v45 }
 0x144   : > { %v390_v51 = vld [vmem:[#allocation2 + $0x38] sm:$0xff] }
 0x145   : > { %425 = vrot.lane.b32.xlu0 %v392_v49, %s2874_s25  ;;  %v391_v50 = vld [vmem:[#allocation2 + $0x40] sm:$0x3] }
 0x146   : > { %427 = vrot.lane.b32.xlu1 %v393_v48, %s2874_s25 }
 0x14d   : > { %421 = vrot.lane.b32.xlu0 %v390_v51, %s2874_s25 }
 0x14e   : > { %423 = vrot.lane.b32.xlu1 %v391_v50, %s2874_s25  ;;  %s2478_s25 = sshll.u32 %s241_s7, 3 }
 0x171   : > { %v408_v52 = vpop.permute.xlu2 %407 }
 0x172   : > { %444 = vst.msk [vmem:[#allocation2] sm:$0xff] %vm443_vm5, %v408_v52 }
 0x179   : > { %v3052_v53 = vld [vmem:[#allocation2] sm:$0xff]  ;;  %v414_v54 = vpop.permute.xlu2 %413 }
 0x17a   : > { %468 = vst.msk [vmem:[#allocation3] sm:$0xff] %vm467_vm6, %v3052_v53  ;;  %492 = vrot.lane.b32.xlu2 %v3052_v53, %s2875_s27 }
 0x17b   : > { %448 = vst.msk [vmem:[#allocation2 + $0x18] sm:$0xff] %vm443_vm5, %v414_v54 }
 0x181   : > { %v3071_v59 = vld [vmem:[#allocation3] sm:$0xff] }
 0x182   : > { %v3059_v55 = vld [vmem:[#allocation2 + $0x18] sm:$0xff]  ;;  %v884_v60 = vrot.slane %v3071_v59, 4 }
 0x183   : > { %470 = vst.msk [vmem:[#allocation3 + $0x10] sm:$0xff] %vm467_vm6, %v3059_v55  ;;  %496 = vrot.lane.b32.xlu1 %v3059_v55, %s2875_s27 }
 0x189   : > { %v420_v56 = vpop.permute.xlu2 %419 }
 0x18a   : > { %451 = vst.msk [vmem:[#allocation2 + $0x30] sm:$0xff] %vm443_vm5, %v420_v56  ;;  %v811_v30 = vld [vmem:[#allocation3 + $0x10] sm:$0xff] }
 0x18b   : > { %v896_v36 = vrot.slane %v811_v30, 4 }
 0x191   : > { %v3066_v57 = vld [vmem:[#allocation2 + $0x30] sm:$0xff]  ;;  %v430_v58 = vpop.permute.xlu2 %429 }
 0x192   : > { %472 = vst.msk [vmem:[#allocation3 + $0x20] sm:$0xff] %vm467_vm6, %v3066_v57 }
 0x193   : > { %456 = vst.msk [vmem:[#allocation2 + $0x58] sm:$0x3] %vm446_vm7, %v430_v58 }
 0x199   : > { %v3074_v61 = vld [vmem:[#allocation3 + $0x20] sm:$0xff] }
 0x19a   : > { %v3078_v62 = vsel %vm882_vm8, %v3074_v61, %v884_v60  ;;  %v881_v35 = vrot.slane %v3074_v61, 4 }
 0x19b   : > { %v893_v37 = vperm.slane %v3078_v62, %v3164_v28 }
 0x19c   : > { %v883_v43 = vsel %vm882_vm8, %v881_v35, %v3071_v59 }
 0x19d   : > { %v944_v45 = vrot.slane %v893_v37, 4  ;;  %v3202_v49 = vperm.slane %v883_v43, %v3164_v28 }
 0x19f   : > { %v410_v0 = vpop.permute.xlu0 %409 }
 0x1a0   : > { %v412_v63 = vpop.permute.xlu1 %411  ;;  %445 = vst.msk [vmem:[#allocation2 + $0x8] sm:$0xff] %vm443_vm5, %v410_v0 }
 0x1a1   : > { %447 = vst.msk [vmem:[#allocation2 + $0x10] sm:$0x3] %vm446_vm7, %v412_v63 }
 0x1a7   : > { %v3082_v1 = vld [vmem:[#allocation2 + $0x8] sm:$0xff] }
 0x1a8   : > { %v3084_v2 = vld [vmem:[#allocation2 + $0x1] sm:$0xff]  ;;  %v3086_v3 = vld [vmem:[#allocation2 + $0x9] sm:$0xff]  ;;  %469 = vst.msk [vmem:[#allocation3 + $0x8] sm:$0xff] %vm467_vm6, %v3082_v1  ;;  %494 = vrot.lane.b32.xlu0 %v3082_v1, %s2875_s27 }
 0x1a9   : > { %v3090_v4 = vld [vmem:[#allocation2 + $0x2] sm:$0xff]  ;;  %585 = vst.msk [vmem:[#allocation3 + $0xc0] sm:$0xff] %vm467_vm6, %v3084_v2  ;;  %v3096_v5 = vld [vmem:[#allocation2 + $0xa] sm:$0xff] }
 0x1aa   : > { %586 = vst.msk [vmem:[#allocation3 + $0xc8] sm:$0xff] %vm467_vm6, %v3086_v3 }
 0x1ab   : > { %702 = vst.msk [vmem:[#allocation3 + $0x180] sm:$0xff] %vm467_vm6, %v3090_v4 }
 0x1ac   : > { %703 = vst.msk [vmem:[#allocation3 + $0x188] sm:$0xff] %vm467_vm6, %v3096_v5 }
 0x1af   : > { %v416_v7 = vpop.permute.xlu0 %415  ;;  %v810_v59 = vld [vmem:[#allocation3 + $0x8] sm:$0xff] }
 0x1b0   : > { %v418_v6 = vpop.permute.xlu1 %417  ;;  %449 = vst.msk [vmem:[#allocation2 + $0x20] sm:$0xff] %vm443_vm5, %v416_v7  ;;  %500 = vrot.lane.b32.xlu0 %v3066_v57, %s2875_s27 }
 0x1b1   : > { %450 = vst.msk [vmem:[#allocation2 + $0x28] sm:$0x3] %vm446_vm7, %v418_v6  ;;  %v1388_v6 = vrot.slane %v810_v59, 4 }
 0x1b7   : > { %v3108_v9 = vld [vmem:[#allocation2 + $0x20] sm:$0xff]  ;;  %v426_v12 = vpop.permute.xlu0 %425 }
 0x1b8   : > { %v428_v8 = vpop.permute.xlu1 %427  ;;  %v3110_v10 = vld [vmem:[#allocation2 + $0x19] sm:$0xff]  ;;  %v3112_v11 = vld [vmem:[#allocation2 + $0x21] sm:$0xff]  ;;  %471 = vst.msk [vmem:[#allocation3 + $0x18] sm:$0xff] %vm467_vm6, %v3108_v9  ;;  %498 = vrot.lane.b32.xlu2 %v3108_v9, %s2875_s27 }
 0x1b9   : > { %455 = vst.msk [vmem:[#allocation2 + $0x50] sm:$0xff] %vm443_vm5, %v428_v8  ;;  %v3117_v13 = vld [vmem:[#allocation2 + $0x1a] sm:$0xff]  ;;  %v3123_v14 = vld [vmem:[#allocation2 + $0x22] sm:$0xff] }
 0x1ba   : > { %587 = vst.msk [vmem:[#allocation3 + $0xd0] sm:$0xff] %vm467_vm6, %v3110_v10 }
 0x1bb   : > { %588 = vst.msk [vmem:[#allocation3 + $0xd8] sm:$0xff] %vm467_vm6, %v3112_v11 }
 0x1bc   : > { %704 = vst.msk [vmem:[#allocation3 + $0x190] sm:$0xff] %vm467_vm6, %v3117_v13 }
 0x1bd   : > { %705 = vst.msk [vmem:[#allocation3 + $0x198] sm:$0xff] %vm467_vm6, %v3123_v14 }
 0x1be   : > { %454 = vst.msk [vmem:[#allocation2 + $0x48] sm:$0xff] %vm443_vm5, %v426_v12 }
 0x1bf   : > { %v422_v19 = vpop.permute.xlu0 %421  ;;  %v812_v20 = vld [vmem:[#allocation3 + $0x18] sm:$0xff] }
 0x1c0   : > { %v3132_v15 = vld [vmem:[#allocation2 + $0x50] sm:$0xff]  ;;  %v424_v18 = vpop.permute.xlu1 %423  ;;  %452 = vst.msk [vmem:[#allocation2 + $0x38] sm:$0xff] %vm443_vm5, %v422_v19  ;;  %v1400_v26 = vrot.slane %v812_v20, 4 }
 0x1c1   : > { %v3134_v16 = vld [vmem:[#allocation2 + $0x51] sm:$0xff]  ;;  %475 = vst.msk [vmem:[#allocation3 + $0x38] sm:$0xff] %vm467_vm6, %v3132_v15  ;;  %506 = vrot.lane.b32.xlu0 %v3132_v15, %s2875_s27 }
 0x1c2   : > { %v3136_v17 = vld [vmem:[#allocation2 + $0x52] sm:$0xff]  ;;  %592 = vst.msk [vmem:[#allocation3 + $0xf8] sm:$0xff] %vm467_vm6, %v3134_v16 }
 0x1c3   : > { %709 = vst.msk [vmem:[#allocation3 + $0x1b8] sm:$0xff] %vm467_vm6, %v3136_v17 }
 0x1c4   : > { %453 = vst.msk [vmem:[#allocation2 + $0x40] sm:$0x3] %vm446_vm7, %v424_v18 }
 0x1c5   : > { %v3148_v23 = vld [vmem:[#allocation2 + $0x48] sm:$0xff] }
 0x1c6   : > { %v3150_v24 = vld [vmem:[#allocation2 + $0x49] sm:$0xff]  ;;  %474 = vst.msk [vmem:[#allocation3 + $0x30] sm:$0xff] %vm467_vm6, %v3148_v23  ;;  %504 = vrot.lane.b32.xlu2 %v3148_v23, %s2875_s27 }
 0x1c7   : > { %v3152_v25 = vld [vmem:[#allocation2 + $0x4a] sm:$0xff]  ;;  %591 = vst.msk [vmem:[#allocation3 + $0xf0] sm:$0xff] %vm467_vm6, %v3150_v24  ;;  %v3167_v31 = vld [vmem:[#allocation2 + $0x38] sm:$0xff] }
 0x1c8   : > { %v816_v27 = vld [vmem:[#allocation3 + $0x38] sm:$0xff]  ;;  %708 = vst.msk [vmem:[#allocation3 + $0x1b0] sm:$0xff] %vm467_vm6, %v3152_v25  ;;  %502 = vrot.lane.b32.xlu1 %v3167_v31, %s2875_s27 }
 0x1c9   : > { %545 = vrot.lane.b32.xlu0 %v3059_v55, %s2877_s5  ;;  %v1401_v29 = vsel %vm882_vm8, %v816_v27, %v1400_v26  ;;  %v3169_v32 = vld [vmem:[#allocation2 + $0x31] sm:$0xff]  ;;  %473 = vst.msk [vmem:[#allocation3 + $0x28] sm:$0xff] %vm467_vm6, %v3167_v31  ;;  %v1398_v56 = vrot.slane %v816_v27, 4  ;;  %v3304_v27 = vunpack.c.0.s8 %v935_v22 }
 0x1ca   : > { %v2507_v34 = vld [vmem:[#allocation2 + $0x32] sm:$0xff]  ;;  %589 = vst.msk [vmem:[#allocation3 + $0xe0] sm:$0xff] %vm467_vm6, %v3169_v32  ;;  %v1409_v0 = vperm.slane %v1401_v29, %v3164_v28 }
 0x1cb   : > { %v3171_v33 = vld [vmem:[#allocation2 + $0x39] sm:$0xff]  ;;  %706 = vst.msk [vmem:[#allocation3 + $0x1a0] sm:$0xff] %vm467_vm6, %v2507_v34  ;;  %v1399_v58 = vsel %vm882_vm8, %v1398_v56, %v812_v20 }
 0x1cc   : > { %v2508_v38 = vld [vmem:[#allocation2 + $0x3a] sm:$0xff]  ;;  %590 = vst.msk [vmem:[#allocation3 + $0xe8] sm:$0xff] %vm467_vm6, %v3171_v33  ;;  %v3226_v61 = vperm.slane %v1399_v58, %v3164_v28  ;;  %v1446_v12 = vrot.slane %v1409_v0, 4 }
 0x1cd   : > { %v815_v39 = vld [vmem:[#allocation3 + $0x30] sm:$0xff]  ;;  %707 = vst.msk [vmem:[#allocation3 + $0x1a8] sm:$0xff] %vm467_vm6, %v2508_v38 }
 0x1ce   : > { %543 = vrot.lane.b32.xlu2 %v3082_v1, %s2877_s5  ;;  %v894_v40 = vrot.slane %v815_v39, 4  ;;  %v897_v41 = vsel %vm882_vm8, %v815_v39, %v896_v36  ;;  %v1434_v63 = vrot.slane %v3226_v61, 4 }
 0x1cf   : > { %v905_v42 = vperm.slane %v897_v41, %v3164_v28 }
 0x1d0   : > { %v895_v44 = vsel %vm882_vm8, %v894_v40, %v811_v30  ;;  %541 = vrot.lane.b32.xlu1 %v3052_v53, %s2877_s5  ;;  %v814_v55 = vld [vmem:[#allocation3 + $0x28] sm:$0xff] }
 0x1d1   : > { %779 = vrot.lane.b32.xlu0 %v3117_v13, %s2877_s5  ;;  %v3196_v46 = vperm.slane %v895_v44, %v3164_v28  ;;  %v942_v47 = vrot.slane %v905_v42, 4  ;;  %v3199_v48 = vsel %vm882_vm8, %v905_v42, %v944_v45  ;;  %v1386_v53 = vrot.slane %v814_v55, 4 }
 0x1d2   : > { %v1389_v7 = vsel %vm882_vm8, %v814_v55, %v1388_v6  ;;  %v953_v39 = vperm.slane %v3199_v48, %v3304_v27 }
 0x1d3   : > { %v930_v50 = vrot.slane %v3196_v46, 4  ;;  %v3208_v52 = vsel %vm882_vm8, %v942_v47, %v893_v37  ;;  %v1387_v60 = vsel %vm882_vm8, %v1386_v53, %v810_v59  ;;  %v1397_v8 = vperm.slane %v1389_v7, %v3164_v28 }
 0x1d4   : > { %v493_v51 = vpop.permute.xlu2 %492  ;;  %v3231_v62 = vperm.slane %v1387_v60, %v3164_v28  ;;  %v949_v35 = vperm.slane %v3208_v52, %v3304_v27  ;;  %v992_v55 = vrot.slane %v953_v39, 4 }
 0x1d5   : > { %517 = vst.msk [vmem:[#allocation3 + $0x40] sm:$0xff] %vm467_vm6, %v493_v51  ;;  %v3213_v54 = vsel %vm882_vm8, %v930_v50, %v3202_v49  ;;  %v3246_v18 = vsel %vm882_vm8, %v1446_v12, %v1397_v8  ;;  %v1448_v19 = vrot.slane %v1397_v8, 4 }
 0x1d6   : > { %789 = vrot.lane.b32.xlu2 %v3136_v17, %s2877_s5  ;;  %v3240_v1 = vsel %vm882_vm8, %v1434_v63, %v3231_v62  ;;  %v988_v45 = vrot.slane %v949_v35, 4 }
 0x1d8   : > { %787 = vrot.lane.b32.xlu1 %v3152_v25, %s2877_s5 }
 0x1d9   : > { %785 = vrot.lane.b32.xlu0 %v2508_v38, %s2877_s5 }
 0x1de   : > { %783 = vrot.lane.b32.xlu2 %v2507_v34, %s2877_s5 }
 0x1e0   : > { %781 = vrot.lane.b32.xlu1 %v3123_v14, %s2877_s5 }
 0x1e1   : > { %621 = vrot.lane.b32.xlu0 %v3150_v24, %s2875_s27 }
 0x1e6   : > { %736 = vrot.lane.b32.xlu2 %v2508_v38, %s2875_s27 }
 0x1e8   : > { %734 = vrot.lane.b32.xlu1 %v2507_v34, %s2875_s27 }
 0x1e9   : > { %740 = vrot.lane.b32.xlu0 %v3136_v17, %s2875_s27  ;;  %v3251_v17 = vsel %vm882_vm8, %v1409_v0, %v1448_v19 }
 0x1ee   : > { %738 = vrot.lane.b32.xlu2 %v3152_v25, %s2875_s27 }
 0x1f0   : > { %623 = vrot.lane.b32.xlu1 %v3134_v16, %s2875_s27 }
 0x1f1   : > { %666 = vrot.lane.b32.xlu0 %v3169_v32, %s2877_s5 }
 0x1f5   : > { %v497_v20 = vpop.permute.xlu1 %496 }
 0x1f6   : > { %777 = vrot.lane.b32.xlu2 %v3096_v5, %s2877_s5  ;;  %519 = vst.msk [vmem:[#allocation3 + $0x50] sm:$0xff] %vm467_vm6, %v497_v20 }
 0x1f8   : > { %775 = vrot.lane.b32.xlu1 %v3090_v4, %s2877_s5 }
 0x1f9   : > { %728 = vrot.lane.b32.xlu0 %v3096_v5, %s2875_s27 }
 0x1fe   : > { %726 = vrot.lane.b32.xlu2 %v3090_v4, %s2875_s27 }
 0x200   : > { %668 = vrot.lane.b32.xlu1 %v3171_v33, %s2877_s5 }
 0x201   : > { %553 = vrot.lane.b32.xlu0 %v3148_v23, %s2877_s5  ;;  %v817_v23 = vld [vmem:[#allocation3 + $0x40] sm:$0xff] }
 0x202   : > { %v908_v29 = vrot.slane %v817_v23, 4 }
 0x206   : > { %732 = vrot.lane.b32.xlu2 %v3123_v14, %s2875_s27 }
 0x208   : > { %730 = vrot.lane.b32.xlu1 %v3117_v13, %s2875_s27 }
 0x209   : > { %615 = vrot.lane.b32.xlu0 %v3112_v11, %s2875_s27 }
 0x20e   : > { %613 = vrot.lane.b32.xlu2 %v3110_v10, %s2875_s27 }
 0x210   : > { %555 = vrot.lane.b32.xlu1 %v3132_v15, %s2877_s5  ;;  %v819_v15 = vld [vmem:[#allocation3 + $0x50] sm:$0xff] }
 0x211   : > { %670 = vrot.lane.b32.xlu0 %v3150_v24, %s2877_s5  ;;  %v920_v24 = vrot.slane %v819_v15, 4 }
 0x212   : > { %v499_v4 = vpop.permute.xlu2 %498 }
 0x213   : > { %520 = vst.msk [vmem:[#allocation3 + $0x58] sm:$0xff] %vm467_vm6, %v499_v4 }
 0x216   : > { %619 = vrot.lane.b32.xlu2 %v3171_v33, %s2875_s27 }
 0x218   : > { %617 = vrot.lane.b32.xlu1 %v3169_v32, %s2875_s27 }
 0x219   : > { %660 = vrot.lane.b32.xlu0 %v3086_v3, %s2877_s5 }
 0x21a   : > { %v495_v5 = vpop.permute.xlu0 %494  ;;  %v820_v59 = vld [vmem:[#allocation3 + $0x58] sm:$0xff] }
 0x21b   : > { %518 = vst.msk [vmem:[#allocation3 + $0x48] sm:$0xff] %vm467_vm6, %v495_v5  ;;  %v1424_v0 = vrot.slane %v820_v59, 4 }
 0x21e   : > { %658 = vrot.lane.b32.xlu2 %v3084_v2, %s2877_s5 }
 0x220   : > { %v505_v13 = vpop.permute.xlu2 %504  ;;  %672 = vrot.lane.b32.xlu1 %v3134_v16, %s2877_s5 }
 0x221   : > { %547 = vrot.lane.b32.xlu0 %v3108_v9, %s2877_s5  ;;  %523 = vst.msk [vmem:[#allocation3 + $0x70] sm:$0xff] %vm467_vm6, %v505_v13 }
 0x222   : > { %v501_v14 = vpop.permute.xlu0 %500  ;;  %v818_v4 = vld [vmem:[#allocation3 + $0x48] sm:$0xff] }
 0x223   : > { %521 = vst.msk [vmem:[#allocation3 + $0x60] sm:$0xff] %vm467_vm6, %v501_v14  ;;  %v1412_v21 = vrot.slane %v818_v4, 4 }
 0x226   : > { %664 = vrot.lane.b32.xlu2 %v3112_v11, %s2877_s5 }
 0x228   : > { %v544_v25 = vpop.permute.xlu2 %543  ;;  %v823_v9 = vld [vmem:[#allocation3 + $0x70] sm:$0xff]  ;;  %662 = vrot.lane.b32.xlu1 %v3110_v10, %s2877_s5 }
 0x229   : > { %609 = vrot.lane.b32.xlu0 %v3084_v2, %s2875_s27  ;;  %567 = vst.msk [vmem:[#allocation3 + $0x88] sm:$0xff] %vm467_vm6, %v544_v25  ;;  %v918_v26 = vrot.slane %v823_v9, 4  ;;  %v921_v16 = vsel %vm882_vm8, %v823_v9, %v920_v24 }
 0x22a   : > { %v929_v30 = vperm.slane %v921_v16, %v3164_v28  ;;  %v821_v11 = vld [vmem:[#allocation3 + $0x60] sm:$0xff] }
 0x22b   : > { %v919_v32 = vsel %vm882_vm8, %v918_v26, %v819_v15  ;;  %v906_v33 = vrot.slane %v821_v11, 4  ;;  %v909_v34 = vsel %vm882_vm8, %v821_v11, %v908_v29  ;;  %v932_v15 = vrot.slane %v3202_v49, 4 }
 0x22c   : > { %v925_v2 = vperm.slane %v919_v32, %v3164_v28  ;;  %v917_v36 = vperm.slane %v909_v34, %v3164_v28  ;;  %v966_v37 = vrot.slane %v929_v30, 4  ;;  %v1453_v49 = vperm.slane %v3246_v18, %v3304_v27 }
 0x22d   : > { %v907_v38 = vsel %vm882_vm8, %v906_v33, %v817_v23  ;;  %v933_v25 = vsel %vm882_vm8, %v3196_v46, %v932_v15  ;;  %v3367_v29 = vperm.slane %v3240_v1, %v3304_v27  ;;  %v1436_v32 = vrot.slane %v3231_v62, 4 }
 0x22e   : > { %551 = vrot.lane.b32.xlu2 %v3167_v31, %s2877_s5  ;;  %v913_v10 = vperm.slane %v907_v38, %v3164_v28  ;;  %v954_v40 = vrot.slane %v925_v2, 4  ;;  %v967_v41 = vsel %vm882_vm8, %v966_v37, %v917_v36  ;;  %v968_v42 = vrot.slane %v917_v36, 4 }
 0x22f   : > { %v973_v44 = vperm.slane %v967_v41, %v3304_v27  ;;  %4496 = vst [vmem:[#allocation15_spill] sm:$0xff] %v3367_v29  ;;  %v1457_v18 = vperm.slane %v3251_v17, %v3304_v27 }
 0x230   : > { %v790_v43 = vpop.permute.xlu2 %789  ;;  %v955_v47 = vsel %vm882_vm8, %v954_v40, %v913_v10  ;;  %v969_v31 = vsel %vm882_vm8, %v929_v30, %v968_v42  ;;  %549 = vrot.lane.b32.xlu1 %v3066_v57, %s2877_s5  ;;  %v956_v13 = vrot.slane %v913_v10, 4  ;;  %v1484_v40 = vrot.slane %v3367_v29, 4 }
 0x231   : > { %807 = vst.msk [vmem:[#allocation3 + $0x238] sm:$0xff] %vm467_vm6, %v790_v43  ;;  %v3327_v51 = vsel %vm882_vm8, %v973_v44, %v988_v45  ;;  %v986_v48 = vrot.slane %v973_v44, 4  ;;  %v977_v52 = vperm.slane %v969_v31, %v3304_v27  ;;  %v3383_v38 = vperm.slane %v955_v47, %v3304_v27 }
 0x232   : > { %4491 = vst [vmem:[#allocation10_spill] sm:$0xff] %v3327_v51  ;;  %v1437_v31 = vsel %vm882_vm8, %v3226_v61, %v1436_v32 }
 0x233   : > { %v507_v50 = vpop.permute.xlu0 %506  ;;  %v3334_v56 = vsel %vm882_vm8, %v986_v48, %v949_v35  ;;  %v3337_v53 = vsel %vm882_vm8, %v977_v52, %v992_v55  ;;  %v990_v58 = vrot.slane %v977_v52, 4  ;;  %4497 = vst [vmem:[#allocation16_spill] sm:$0xff] %v3383_v38  ;;  %v1496_v52 = vrot.slane %v1457_v18, 4 }
 0x234   : > { %524 = vst.msk [vmem:[#allocation3 + $0x78] sm:$0xff] %vm467_vm6, %v507_v50 }
 0x235   : > { %4492 = vst [vmem:[#allocation11_spill] sm:$0xff] %v3334_v56  ;;  %v3340_v60 = vsel %vm882_vm8, %v990_v58, %v953_v39  ;;  %v1492_v39 = vrot.slane %v1453_v49, 4 }
 0x236   : > { %4493 = vst [vmem:[#allocation12_spill] sm:$0xff] %v3337_v53 }
 0x237   : > { %4494 = vst [vmem:[#allocation13_spill] sm:$0xff] %v3340_v60 }
 0x238   : > { %v784_v63 = vpop.permute.xlu2 %783  ;;  %611 = vrot.lane.b32.xlu1 %v3086_v3, %s2875_s27  ;;  %v3355_v3 = vperm.slane %v3213_v54, %v3304_v27  ;;  %v957_v54 = vsel %vm882_vm8, %v925_v2, %v956_v13 }
 0x239   : > { %804 = vst.msk [vmem:[#allocation3 + $0x220] sm:$0xff] %vm467_vm6, %v784_v63  ;;  %v3380_v37 = vperm.slane %v957_v54, %v3304_v27  ;;  %v880_v54 = vld [vmem:[#allocation3 + $0x238] sm:$0xff] }
 0x23a   : > { %v503_v8 = vpop.permute.xlu1 %502  ;;  %4495 = vst [vmem:[#allocation14_spill] sm:$0xff] %v3355_v3  ;;  %v980_v33 = vrot.slane %v3355_v3, 4 }
 0x23b   : > { %v546_v6 = vpop.permute.xlu0 %545  ;;  %v824_v7 = vld [vmem:[#allocation3 + $0x78] sm:$0xff]  ;;  %522 = vst.msk [vmem:[#allocation3 + $0x68] sm:$0xff] %vm467_vm6, %v503_v8  ;;  %v982_v61 = vrot.slane %v3380_v37, 4  ;;  %v3424_v8 = vperm.slane %v933_v25, %v3304_v27 }
 0x23c   : > { %568 = vst.msk [vmem:[#allocation3 + $0x90] sm:$0xff] %vm467_vm6, %v546_v6  ;;  %v1425_v57 = vsel %vm882_vm8, %v824_v7, %v1424_v0  ;;  %v1422_v12 = vrot.slane %v824_v7, 4  ;;  %v3407_v58 = vsel %vm882_vm8, %v3383_v38, %v980_v33  ;;  %v3560_v0 = vld [vmem:[#allocation3 + $0xe8] sm:$0xff] }
 0x23d   : > { %v1433_v14 = vperm.slane %v1425_v57, %v3164_v28  ;;  %v3440_v15 = vsel %vm882_vm8, %v982_v61, %v3424_v8 }
 0x23e   : > { %v1423_v5 = vsel %vm882_vm8, %v1422_v12, %v820_v59  ;;  %v3427_v12 = vperm.slane %v1437_v31, %v3304_v27  ;;  %4502 = vst [vmem:[#allocation21_spill] sm:$0xff] %v3440_v15 }
 0x23f   : > { %v1429_v24 = vperm.slane %v1423_v5, %v3164_v28  ;;  %v1470_v11 = vrot.slane %v1433_v14, 4 }
 0x240   : > { %v737_v19 = vpop.permute.xlu2 %736 }
 0x241   : > { %756 = vst.msk [vmem:[#allocation3 + $0x1e8] sm:$0xff] %vm467_vm6, %v737_v19  ;;  %v1458_v35 = vrot.slane %v1429_v24, 4 }
 0x242   : > { %v542_v22 = vpop.permute.xlu1 %541  ;;  %v822_v23 = vld [vmem:[#allocation3 + $0x68] sm:$0xff] }
 0x243   : > { %v780_v20 = vpop.permute.xlu0 %779  ;;  %566 = vst.msk [vmem:[#allocation3 + $0x80] sm:$0xff] %vm467_vm6, %v542_v22  ;;  %v1410_v9 = vrot.slane %v822_v23, 4  ;;  %v1413_v26 = vsel %vm882_vm8, %v822_v23, %v1412_v21 }
 0x244   : > { %802 = vst.msk [vmem:[#allocation3 + $0x210] sm:$0xff] %vm467_vm6, %v780_v20  ;;  %v1421_v30 = vperm.slane %v1413_v26, %v3164_v28 }
 0x245   : > { %v1411_v46 = vsel %vm882_vm8, %v1410_v9, %v818_v4 }
 0x246   : > { %v1417_v2 = vperm.slane %v1411_v46, %v3164_v28  ;;  %v1471_v1 = vsel %vm882_vm8, %v1470_v11, %v1421_v30  ;;  %v1472_v36 = vrot.slane %v1421_v30, 4  ;;  %v1846_v11 = vrot.slane %v880_v54, 4 }
 0x247   : > { %v1477_v62 = vperm.slane %v1471_v1, %v3304_v27 }
 0x248   : > { %v739_v16 = vpop.permute.xlu2 %738  ;;  %v1460_v10 = vrot.slane %v1417_v2, 4  ;;  %v1459_v17 = vsel %vm882_vm8, %v1458_v35, %v1417_v2  ;;  %v1473_v41 = vsel %vm882_vm8, %v1433_v14, %v1472_v36 }
 0x249   : > { %757 = vst.msk [vmem:[#allocation3 + $0x1f0] sm:$0xff] %vm467_vm6, %v739_v16  ;;  %v3390_v42 = vperm.slane %v1459_v17, %v3304_v27  ;;  %v3393_v43 = vsel %vm882_vm8, %v1477_v62, %v1492_v39  ;;  %v1490_v44 = vrot.slane %v1477_v62, 4  ;;  %v1481_v45 = vperm.slane %v1473_v41, %v3304_v27 }
 0x24a   : > { %v788_v47 = vpop.permute.xlu1 %787  ;;  %v1461_v50 = vsel %vm882_vm8, %v1429_v24, %v1460_v10 }
 0x24b   : > { %v786_v34 = vpop.permute.xlu0 %785  ;;  %4498 = vst [vmem:[#allocation17_spill] sm:$0xff] %v3390_v42  ;;  %v3403_v55 = vperm.slane %v1461_v50, %v3304_v27  ;;  %v3411_v59 = vsel %vm882_vm8, %v3390_v42, %v1484_v40  ;;  %v3417_v6 = vsel %vm882_vm8, %v1490_v44, %v1453_v49  ;;  %v3420_v7 = vsel %vm882_vm8, %v1481_v45, %v1496_v52  ;;  %v864_v50 = vld [vmem:[#allocation3 + $0x1b8] sm:$0xff] }
 0x24c   : > { %805 = vst.msk [vmem:[#allocation3 + $0x228] sm:$0xff] %vm467_vm6, %v786_v34  ;;  %v1494_v57 = vrot.slane %v1481_v45, 4  ;;  %v836_v52 = vld [vmem:[#allocation3 + $0xd8] sm:$0xff] }
 0x24d   : > { %806 = vst.msk [vmem:[#allocation3 + $0x230] sm:$0xff] %vm467_vm6, %v788_v47  ;;  %v1486_v19 = vrot.slane %v3403_v55, 4 }
 0x24e   : > { %4499 = vst [vmem:[#allocation18_spill] sm:$0xff] %v3417_v6  ;;  %v3435_v14 = vsel %vm882_vm8, %v1494_v57, %v1457_v18  ;;  %v860_v57 = vld [vmem:[#allocation3 + $0x198] sm:$0xff] }
 0x24f   : > { %4500 = vst [vmem:[#allocation19_spill] sm:$0xff] %v3420_v7  ;;  %v3444_v21 = vsel %vm882_vm8, %v1486_v19, %v3427_v12  ;;  %v863_v19 = vld [vmem:[#allocation3 + $0x1b0] sm:$0xff] }
 0x250   : > { %v778_v63 = vpop.permute.xlu2 %777  ;;  %4501 = vst [vmem:[#allocation20_spill] sm:$0xff] %v3435_v14 }
 0x251   : > { %801 = vst.msk [vmem:[#allocation3 + $0x208] sm:$0xff] %vm467_vm6, %v778_v63 }
 0x252   : > { %4503 = vst [vmem:[#allocation22_spill] sm:$0xff] %v3444_v21  ;;  %v782_v25 = vpop.permute.xlu1 %781 }
 0x253   : > { %v622_v4 = vpop.permute.xlu0 %621  ;;  %v878_v5 = vld [vmem:[#allocation3 + $0x228] sm:$0xff]  ;;  %803 = vst.msk [vmem:[#allocation3 + $0x218] sm:$0xff] %vm467_vm6, %v782_v25  ;;  %v840_v25 = vld [vmem:[#allocation3 + $0xf8] sm:$0xff] }
 0x254   : > { %640 = vst.msk [vmem:[#allocation3 + $0x130] sm:$0xff] %vm467_vm6, %v622_v4  ;;  %v1834_v24 = vrot.slane %v878_v5, 4  ;;  %v859_v4 = vld [vmem:[#allocation3 + $0x190] sm:$0xff] }
 0x258   : > { %v727_v9 = vpop.permute.xlu2 %726  ;;  %v874_v26 = vld [vmem:[#allocation3 + $0x208] sm:$0xff] }
 0x259   : > { %751 = vst.msk [vmem:[#allocation3 + $0x1c0] sm:$0xff] %vm467_vm6, %v727_v9  ;;  %v1835_v49 = vsel %vm882_vm8, %v1834_v24, %v874_v26  ;;  %v1836_v34 = vrot.slane %v874_v26, 4  ;;  %v3482_v24 = vld [vmem:[#allocation3 + $0xd0] sm:$0xff] }
 0x25a   : > { %v1841_v30 = vperm.slane %v1835_v49, %v3164_v28  ;;  %v735_v46 = vpop.permute.xlu1 %734  ;;  %v876_v32 = vld [vmem:[#allocation3 + $0x218] sm:$0xff]  ;;  %v3484_v26 = vld [vmem:[#allocation3 + $0x230] sm:$0xff]  ;;  %v1536_v49 = vrot.slane %v836_v52, 4 }
 0x25b   : > { %v741_v16 = vpop.permute.xlu0 %740  ;;  %755 = vst.msk [vmem:[#allocation3 + $0x1e0] sm:$0xff] %vm467_vm6, %v735_v46  ;;  %v1847_v33 = vsel %vm882_vm8, %v1846_v11, %v876_v32  ;;  %v1848_v18 = vrot.slane %v876_v32, 4  ;;  %v1837_v41 = vsel %vm882_vm8, %v878_v5, %v1836_v34  ;;  %v1734_v5 = vrot.slane %v864_v50, 4  ;;  %v3490_v11 = vld [vmem:[#allocation3 + $0xc0] sm:$0xff]  ;;  %v839_v46 = vld [vmem:[#allocation3 + $0xf0] sm:$0xff] }
 0x25c   : > { %758 = vst.msk [vmem:[#allocation3 + $0x1f8] sm:$0xff] %vm467_vm6, %v741_v16  ;;  %v1853_v35 = vperm.slane %v1847_v33, %v3164_v28  ;;  %v1860_v1 = vrot.slane %v1841_v30, 4  ;;  %v3476_v31 = vperm.slane %v1837_v41, %v3164_v28  ;;  %v1232_v32 = vrot.slane %v859_v4, 4  ;;  %v3492_v33 = vld [vmem:[#allocation3 + $0xc8] sm:$0xff] }
 0x25d   : > { %v1849_v36 = vsel %vm882_vm8, %v880_v54, %v1848_v18  ;;  %v1230_v54 = vrot.slane %v863_v19, 4  ;;  %v1032_v18 = vrot.slane %v3482_v24, 4  ;;  %v1537_v34 = vsel %vm882_vm8, %v840_v25, %v1536_v49  ;;  %v3514_v49 = vld [vmem:[#allocation3 + $0x188] sm:$0xff] }
 0x25e   : > { %v1861_v62 = vsel %vm882_vm8, %v1853_v35, %v1860_v1  ;;  %v3462_v10 = vperm.slane %v1849_v36, %v3164_v28  ;;  %v1858_v17 = vrot.slane %v1853_v35, 4  ;;  %v1735_v35 = vsel %vm882_vm8, %v1734_v5, %v860_v57 }
 0x25f   : > { %v3465_v40 = vperm.slane %v1861_v62, %v3304_v27  ;;  %v1534_v36 = vrot.slane %v840_v25, 4  ;;  %v1033_v41 = vsel %vm882_vm8, %v839_v46, %v1032_v18  ;;  %v984_v5 = vrot.slane %v3424_v8, 4  ;;  %v875_v25 = vld [vmem:[#allocation3 + $0x210] sm:$0xff] }
 0x260   : > { %v733_v2 = vpop.permute.xlu2 %732  ;;  %v1870_v44 = vrot.slane %v3462_v10, 4  ;;  %v3471_v45 = vsel %vm882_vm8, %v1858_v17, %v1841_v30  ;;  %v1736_v30 = vrot.slane %v860_v57, 4  ;;  %v1020_v17 = vrot.slane %v3490_v11, 4 }
 0x261   : > { %754 = vst.msk [vmem:[#allocation3 + $0x1d8] sm:$0xff] %vm467_vm6, %v733_v2  ;;  %2063 = vrot.lane.b32.xlu2 %v3465_v40, %s2879_s8  ;;  %v1342_v2 = vrot.slane %v3484_v26, 4  ;;  %v3509_v57 = vperm.slane %v1537_v34, %v3164_v28  ;;  %v1030_v8 = vrot.slane %v839_v46, 4  ;;  %v877_v34 = vld [vmem:[#allocation3 + $0x220] sm:$0xff] }
 0x262   : > { %v624_v47 = vpop.permute.xlu1 %623  ;;  %v1871_v63 = vsel %vm882_vm8, %v1870_v44, %v3476_v31  ;;  %v1737_v1 = vsel %vm882_vm8, %v864_v50, %v1736_v30  ;;  %v861_v44 = vld [vmem:[#allocation3 + $0x1a0] sm:$0xff]  ;;  %v3517_v30 = vperm.slane %v1735_v35, %v3164_v28  ;;  %v862_v35 = vld [vmem:[#allocation3 + $0x1a8] sm:$0xff] }
 0x263   : > { %v667_v39 = vpop.permute.xlu0 %666  ;;  %641 = vst.msk [vmem:[#allocation3 + $0x138] sm:$0xff] %vm467_vm6, %v624_v47  ;;  %v3487_v16 = vperm.slane %v1871_v63, %v3304_v27  ;;  %v1231_v47 = vsel %vm882_vm8, %v1230_v54, %v859_v4  ;;  %v1524_v63 = vrot.slane %v3492_v33, 4  ;;  %v1343_v4 = vsel %vm882_vm8, %v1342_v2, %v875_v25  ;;  %v3536_v2 = vld [vmem:[#allocation3 + $0xe0] sm:$0xff] }
 0x264   : > { %687 = vst.msk [vmem:[#allocation3 + $0x160] sm:$0xff] %vm467_vm6, %v667_v39  ;;  %v1488_v39 = vrot.slane %v3427_v12, 4  ;;  %v3525_v54 = vperm.slane %v1033_v41, %v3164_v28 }
 0x265   : > { %4504 = vst [vmem:[#allocation23_spill] sm:$0xff] %v3487_v16 }
 0x266   : > { %v1489_v12 = vsel %vm882_vm8, %v3403_v55, %v1488_v39  ;;  %v1535_v55 = vsel %vm882_vm8, %v1534_v36, %v836_v52  ;;  %v1724_v52 = vrot.slane %v3514_v49, 4  ;;  %v1349_v36 = vperm.slane %v1343_v4, %v3164_v28 }
 0x268   : > { %v614_v61 = vpop.permute.xlu2 %613 }
 0x269   : > { %636 = vst.msk [vmem:[#allocation3 + $0x110] sm:$0xff] %vm467_vm6, %v614_v61  ;;  %2103 = vrot.lane.b32.xlu2 %v3487_v16, %s2880_s9  ;;  %v1233_v61 = vsel %vm882_vm8, %v863_v19, %v1232_v32  ;;  %v3520_v19 = vperm.slane %v1737_v1, %v3164_v28  ;;  %v985_v32 = vsel %vm882_vm8, %v3380_v37, %v984_v5 }
 0x26a   : > { %v776_v62 = vpop.permute.xlu1 %775  ;;  %v3531_v1 = vperm.slane %v1231_v47, %v3164_v28  ;;  %v3534_v39 = vperm.slane %v1233_v61, %v3164_v28  ;;  %v2651_v41 = vpack.i.bf16 %v1489_v12, %v985_v32  ;;  %v3545_v5 = vperm.slane %v1535_v55, %v3164_v28 }
 0x26b   : > { %v729_v9 = vpop.permute.xlu0 %728  ;;  %800 = vst.msk [vmem:[#allocation3 + $0x200] sm:$0xff] %vm467_vm6, %v776_v62  ;;  %v1218_v62 = vrot.slane %v861_v44, 4  ;;  %v1330_v61 = vrot.slane %v877_v34, 4  ;;  %v1722_v12 = vrot.slane %v862_v35, 4  ;;  %v1021_v32 = vsel %vm882_vm8, %v3536_v2, %v1020_v17 }
 0x26c   : > { %752 = vst.msk [vmem:[#allocation3 + $0x1c8] sm:$0xff] %vm467_vm6, %v729_v9  ;;  %v857_v9 = vld [vmem:[#allocation3 + $0x180] sm:$0xff]  ;;  %v1266_v20 = vrot.slane %v3531_v1, 4  ;;  %v1278_v55 = vrot.slane %v3534_v39, 4  ;;  %v1344_v17 = vrot.slane %v875_v25, 4 }
 0x26d   : > { %v1220_v46 = vrot.slane %v857_v9, 4  ;;  %v1219_v13 = vsel %vm882_vm8, %v1218_v62, %v857_v9  ;;  %v1354_v9 = vrot.slane %v1349_v36, 4  ;;  %v872_v62 = vld [vmem:[#allocation3 + $0x1f8] sm:$0xff] }
 0x26e   : > { %v1225_v25 = vperm.slane %v1219_v13, %v3164_v28  ;;  %v3585_v13 = vld [vmem:[#allocation3 + $0x1e0] sm:$0xff] }
 0x26f   : > { %v1221_v47 = vsel %vm882_vm8, %v861_v44, %v1220_v46  ;;  %v868_v46 = vld [vmem:[#allocation3 + $0x1d8] sm:$0xff] }
 0x270   : > { %v620_v50 = vpop.permute.xlu2 %619  ;;  %v1760_v29 = vrot.slane %v868_v46, 4 }
 0x271   : > { %639 = vst.msk [vmem:[#allocation3 + $0x128] sm:$0xff] %vm467_vm6, %v620_v50  ;;  %2652 = vrot.lane.b32.xlu2 %v2651_v41, %s2881_s10  ;;  %v3566_v50 = vperm.slane %v1021_v32, %v3164_v28 }
 0x272   : > { %v669_v4 = vpop.permute.xlu1 %668  ;;  %v873_v22 = vld [vmem:[#allocation3 + $0x200] sm:$0xff] }
 0x273   : > { %v554_v18 = vpop.permute.xlu0 %553  ;;  %688 = vst.msk [vmem:[#allocation3 + $0x168] sm:$0xff] %vm467_vm6, %v669_v4  ;;  %v1331_v41 = vsel %vm882_vm8, %v1330_v61, %v873_v22  ;;  %v1332_v48 = vrot.slane %v873_v22, 4  ;;  %v1345_v22 = vsel %vm882_vm8, %v3484_v26, %v1344_v17  ;;  %v1723_v4 = vsel %vm882_vm8, %v1722_v12, %v3514_v49  ;;  %v870_v49 = vld [vmem:[#allocation3 + $0x1e8] sm:$0xff] }
 0x274   : > { %572 = vst.msk [vmem:[#allocation3 + $0xb0] sm:$0xff] %vm467_vm6, %v554_v18  ;;  %v3552_v18 = vsel %vm882_vm8, %v1030_v8, %v3482_v24  ;;  %v1337_v37 = vperm.slane %v1331_v41, %v3164_v28  ;;  %v3588_v12 = vperm.slane %v1221_v47, %v3164_v28  ;;  %v1353_v17 = vperm.slane %v1345_v22, %v3164_v28 }
 0x275   : > { %v1333_v61 = vsel %vm882_vm8, %v877_v34, %v1332_v48  ;;  %v1525_v48 = vsel %vm882_vm8, %v3560_v0, %v1524_v63  ;;  %v1758_v34 = vrot.slane %v872_v62, 4  ;;  %v866_v63 = vld [vmem:[#allocation3 + $0x1c8] sm:$0xff] }
 0x276   : > { %v1356_v23 = vrot.slane %v1337_v37, 4  ;;  %v1355_v24 = vsel %vm882_vm8, %v1354_v9, %v1337_v37  ;;  %v1341_v44 = vperm.slane %v1333_v61, %v3164_v28  ;;  %v1725_v37 = vsel %vm882_vm8, %v862_v35, %v1724_v52 }
 0x277   : > { %v3583_v26 = vperm.slane %v1355_v24, %v3304_v27  ;;  %v1729_v9 = vperm.slane %v1723_v4, %v3164_v28  ;;  %v1242_v35 = vrot.slane %v3585_v13, 4  ;;  %v1268_v52 = vrot.slane %v1225_v25, 4 }
 0x278   : > { %v659_v8 = vpop.permute.xlu2 %658  ;;  %v1357_v32 = vsel %vm882_vm8, %v1349_v36, %v1356_v23  ;;  %v1746_v23 = vrot.slane %v870_v49, 4  ;;  %v1748_v4 = vrot.slane %v866_v63, 4 }
 0x279   : > { %683 = vst.msk [vmem:[#allocation3 + $0x140] sm:$0xff] %vm467_vm6, %v659_v8  ;;  %v1368_v8 = vrot.slane %v1341_v44, 4  ;;  %v3595_v24 = vperm.slane %v1357_v32, %v3304_v27  ;;  %v1378_v61 = vrot.slane %v3583_v26, 4  ;;  %v1772_v42 = vrot.slane %v1729_v9, 4 }
 0x27a   : > { %4505 = vst [vmem:[#allocation24_spill] sm:$0xff] %v3583_v26  ;;  %v731_v47 = vpop.permute.xlu1 %730  ;;  %v871_v26 = vld [vmem:[#allocation3 + $0x1f0] sm:$0xff] }
 0x27b   : > { %v616_v41 = vpop.permute.xlu0 %615  ;;  %4506 = vst [vmem:[#allocation25_spill] sm:$0xff] %v3595_v24  ;;  %v1369_v3 = vsel %vm882_vm8, %v1353_v17, %v1368_v8  ;;  %1923 = vrot.lane.b32.xlu1 %v3595_v24, %s2879_s8  ;;  %v1379_v36 = vsel %vm882_vm8, 0.0, %v1378_v61  ;;  %v1366_v8 = vrot.slane %v1353_v17, 4  ;;  %v3618_v61 = vperm.slane %v1725_v37, %v3164_v28 }
 0x27c   : > { %637 = vst.msk [vmem:[#allocation3 + $0x118] sm:$0xff] %vm467_vm6, %v616_v41  ;;  %v1267_v41 = vsel %vm882_vm8, %v1266_v20, %v1225_v25  ;;  %v3606_v22 = vperm.slane %v1369_v3, %v3304_v27  ;;  %v1759_v20 = vsel %vm882_vm8, %v1758_v34, %v868_v46  ;;  %1903 = vrot.lane.b32.xlu2 %v1379_v36, %s2882_s11  ;;  %v865_v3 = vld [vmem:[#allocation3 + $0x1c0] sm:$0xff]  ;;  %v4508_v34 = vrot.slane %v3517_v30, 4 }
 0x27d   : > { %753 = vst.msk [vmem:[#allocation3 + $0x1d0] sm:$0xff] %vm467_vm6, %v731_v47  ;;  %v3611_v25 = vperm.slane %v1267_v41, %v3304_v27  ;;  %v3615_v47 = vsel %vm882_vm8, %v1278_v55, %v3588_v12  ;;  %v1747_v46 = vsel %vm882_vm8, %v1746_v23, %v866_v63  ;;  %v1761_v41 = vsel %vm882_vm8, %v872_v62, %v1760_v29 }
 0x27e   : > { %2003 = vrot.lane.b32.xlu0 %v3606_v22, %s2883_s12  ;;  %v1771_v17 = vsel %vm882_vm8, %v4508_v34, %v1729_v9  ;;  %v1367_v37 = vsel %vm882_vm8, %v1366_v8, %v1341_v44  ;;  %v1765_v38 = vperm.slane %v1759_v20, %v3164_v28  ;;  %v1884_v63 = vrot.slane %v3465_v40, 4 }
 0x27f   : > { %4507 = vst [vmem:[#allocation26_spill] sm:$0xff] %v3611_v25  ;;  %v1269_v23 = vsel %vm882_vm8, %v3531_v1, %v1268_v52  ;;  %v1749_v29 = vsel %vm882_vm8, %v870_v49, %v1748_v4  ;;  %v3638_v62 = vperm.slane %v1525_v48, %v3164_v28  ;;  %v1753_v44 = vperm.slane %v1747_v46, %v3164_v28 }
 0x280   : > { %v665_v32 = vpop.permute.xlu2 %664  ;;  %v3642_v8 = vperm.slane %v1771_v17, %v3304_v27  ;;  %v4510_v9 = vrot.slane %v3520_v19, 4  ;;  %v1373_v1 = vperm.slane %v1367_v37, %v3304_v27  ;;  %v1254_v48 = vrot.slane %v871_v26, 4 }
 0x281   : > { %686 = vst.msk [vmem:[#allocation3 + $0x158] sm:$0xff] %vm467_vm6, %v665_v32  ;;  %v1243_v32 = vsel %vm882_vm8, %v1242_v35, %v865_v3  ;;  %v3645_v35 = vperm.slane %v1761_v41, %v3164_v28  ;;  %v1316_v52 = vrot.slane %v3611_v25, 4  ;;  %v1794_v46 = vrot.slane %v1765_v38, 4 }
 0x282   : > { %4509 = vst [vmem:[#allocation27_spill] sm:$0xff] %v3642_v8  ;;  %v3651_v40 = vsel %vm882_vm8, %v4510_v9, %v3618_v61  ;;  %v1249_v49 = vperm.slane %v1243_v32, %v3164_v28  ;;  %v556_v4 = vpop.permute.xlu1 %555  ;;  %v3657_v34 = vperm.slane %v1269_v23, %v3304_v27  ;;  %v1773_v17 = vsel %vm882_vm8, %v3517_v30, %v1772_v42 }
 0x283   : > { %v671_v36 = vpop.permute.xlu0 %670  ;;  %v3662_v41 = vperm.slane %v1749_v29, %v3164_v28  ;;  %573 = vst.msk [vmem:[#allocation3 + $0xb8] sm:$0xff] %vm467_vm6, %v556_v4  ;;  %1963 = vrot.lane.b32.xlu1 %v1373_v1, %s2880_s9  ;;  %v1244_v37 = vrot.slane %v865_v3, 4  ;;  %v1872_v23 = vrot.slane %v3476_v31, 4  ;;  %v1795_v30 = vsel %vm882_vm8, %v1794_v46, %v1753_v44 }
 0x284   : > { %689 = vst.msk [vmem:[#allocation3 + $0x170] sm:$0xff] %vm467_vm6, %v671_v36  ;;  %v867_v20 = vld [vmem:[#allocation3 + $0x1d0] sm:$0xff]  ;;  %v1885_v36 = vsel %vm882_vm8, 0.0, %v1884_v63  ;;  %v1806_v29 = vrot.slane %v3645_v35, 4  ;;  %v1292_v4 = vrot.slane %v1249_v49, 4  ;;  %v1796_v60 = vrot.slane %v1753_v44, 4 }
 0x285   : > { %v1255_v32 = vsel %vm882_vm8, %v1254_v48, %v867_v20  ;;  %v1256_v9 = vrot.slane %v867_v20, 4  ;;  %2083 = vrot.lane.b32.xlu2 %v1885_v36, %s2881_s10  ;;  %v1245_v3 = vsel %vm882_vm8, %v3585_v13, %v1244_v37  ;;  %v1873_v20 = vsel %vm882_vm8, %v3462_v10, %v1872_v23 }
 0x286   : > { %v1261_v42 = vperm.slane %v1255_v32, %v3164_v28  ;;  %v1807_v46 = vsel %vm882_vm8, %v1806_v29, %v3662_v41  ;;  %v3686_v44 = vperm.slane %v1795_v30, %v3304_v27  ;;  %v1820_v13 = vrot.slane %v3642_v8, 4 }
 0x287   : > { %v1257_v63 = vsel %vm882_vm8, %v871_v26, %v1256_v9  ;;  %v3692_v10 = vperm.slane %v1245_v3, %v3164_v28  ;;  %v4512_v9 = vrot.slane %v3536_v2, 4  ;;  %v3713_v3 = vperm.slane %v1773_v17, %v3304_v27 }
 0x288   : > { %v552_v55 = vpop.permute.xlu2 %551  ;;  %v1290_v31 = vrot.slane %v1261_v42, 4  ;;  %v3680_v36 = vperm.slane %v1257_v63, %v3164_v28  ;;  %4511 = vst [vmem:[#allocation28_spill] sm:$0xff] %v3686_v44  ;;  %v1293_v26 = vsel %vm882_vm8, %v1261_v42, %v1292_v4  ;;  %v1797_v42 = vsel %vm882_vm8, %v1765_v38, %v1796_v60  ;;  %v852_v53 = vld [vmem:[#allocation3 + $0x158] sm:$0xff] }
 0x289   : > { %571 = vst.msk [vmem:[#allocation3 + $0xa8] sm:$0xff] %vm467_vm6, %v552_v55  ;;  %v1382_v55 = vrot.slane %v1373_v1, 4  ;;  %v1019_v23 = vsel %vm882_vm8, %v4512_v9, %v3490_v11  ;;  %v3700_v1 = vperm.slane %v1873_v20, %v3304_v27  ;;  %v3710_v4 = vperm.slane %v1293_v26, %v3304_v27 }
 0x28a   : > { %v1291_v37 = vsel %vm882_vm8, %v1290_v31, %v1249_v49  ;;  %v1302_v32 = vrot.slane %v3680_v36, 4  ;;  %v3707_v49 = vperm.slane %v1807_v46, %v3304_v27  ;;  %v618_v29 = vpop.permute.xlu1 %617  ;;  %v4515_v2 = vrot.slane %v3560_v0, 4 }
 0x28b   : > { %v661_v48 = vpop.permute.xlu0 %660  ;;  %4513 = vst [vmem:[#allocation29_spill] sm:$0xff] %v3700_v1  ;;  %v3703_v30 = vperm.slane %v1291_v37, %v3304_v27  ;;  %2143 = vrot.lane.b32.xlu1 %v3700_v1, %s2883_s12  ;;  %v1383_v60 = vsel %vm882_vm8, 0.0, %v1382_v55  ;;  %v1821_v17 = vsel %vm882_vm8, %v3686_v44, %v1820_v13  ;;  %v3733_v20 = vperm.slane %v1797_v42, %v3304_v27  ;;  %v855_v15 = vld [vmem:[#allocation3 + $0x170] sm:$0xff] }
 0x28c   : > { %684 = vst.msk [vmem:[#allocation3 + $0x148] sm:$0xff] %vm467_vm6, %v661_v48  ;;  %v1303_v11 = vsel %vm882_vm8, %v1302_v32, %v3692_v10  ;;  %v1523_v63 = vsel %vm882_vm8, %v4515_v2, %v3492_v33  ;;  %v1320_v33 = vrot.slane %v3657_v34, 4  ;;  %v1025_v31 = vperm.slane %v1019_v23, %v3164_v28 }
 0x28d   : > { %4514 = vst [vmem:[#allocation30_spill] sm:$0xff] %v3703_v30  ;;  %v1317_v38 = vsel %vm882_vm8, %v3703_v30, %v1316_v52  ;;  %v1309_v48 = vperm.slane %v1303_v11, %v3304_v27  ;;  %1983 = vrot.lane.b32.xlu2 %v1383_v60, %s2884_s13  ;;  %v1285_v46 = vperm.slane %v3615_v47, %v3304_v27  ;;  %v1826_v55 = vrot.slane %v3707_v49, 4 }
 0x28e   : > { %638 = vst.msk [vmem:[#allocation3 + $0x120] sm:$0xff] %vm467_vm6, %v618_v29  ;;  %v2616_v0 = vpack.i.bf16 %v1821_v17, %v1317_v38  ;;  %v1529_v13 = vperm.slane %v1523_v63, %v3164_v28  ;;  %v1321_v37 = vsel %vm882_vm8, %v3710_v4, %v1320_v33  ;;  %v1824_v32 = vrot.slane %v3713_v3, 4 }
 0x28f   : > { %v1322_v52 = vrot.slane %v1309_v48, 4  ;;  %v4516_v9 = vrot.slane %v3525_v54, 4  ;;  %v1037_v47 = vperm.slane %v3552_v18, %v3164_v28  ;;  %v1789_v29 = vperm.slane %v3651_v40, %v3304_v27 }
 0x290   : > { %2617 = vrot.lane.b32.xlu0 %v2616_v0, %s2882_s11  ;;  %v4517_v11 = vrot.slane %v3509_v57, 4  ;;  %v1080_v63 = vrot.slane %v3566_v50, 4  ;;  %v1825_v60 = vsel %vm882_vm8, %v3733_v20, %v1824_v32  ;;  %v1068_v38 = vrot.slane %v1025_v31, 4 }
 0x291   : > { %v1079_v23 = vsel %vm882_vm8, %v4516_v9, %v3566_v50  ;;  %v1323_v42 = vsel %vm882_vm8, %v1322_v52, %v1285_v46  ;;  %v1584_v18 = vrot.slane %v3638_v62, 4  ;;  %v2621_v17 = vpack.i.bf16 %v1825_v60, %v1321_v37  ;;  %v3780_v60 = vld [vmem:[#allocation3 + $0xa8] sm:$0xff] }
 0x292   : > { %v1583_v2 = vsel %vm882_vm8, %v4517_v11, %v3638_v62  ;;  %v1827_v0 = vsel %vm882_vm8, %v1826_v55, %v1789_v29  ;;  %v1572_v33 = vrot.slane %v1529_v13, 4  ;;  %v1570_v52 = vrot.slane %v3545_v5, 4  ;;  %v673_v40 = vpop.permute.xlu1 %672 }
 0x293   : > { %v548_v26 = vpop.permute.xlu0 %547  ;;  %v3765_v9 = vperm.slane %v1079_v23, %v3304_v27  ;;  %v3768_v11 = vperm.slane %v1583_v2, %v3304_v27  ;;  %v1066_v50 = vrot.slane %v1037_v47, 4  ;;  %690 = vst.msk [vmem:[#allocation3 + $0x178] sm:$0xff] %vm467_vm6, %v673_v40  ;;  %2622 = vrot.lane.b32.xlu1 %v2621_v17, %s2881_s10  ;;  %v1324_v62 = vrot.slane %v1285_v46, 4  ;;  %v832_v40 = vld [vmem:[#allocation3 + $0xb8] sm:$0xff] }
 0x294   : > { %569 = vst.msk [vmem:[#allocation3 + $0x98] sm:$0xff] %vm467_vm6, %v548_v26  ;;  %v2681_v26 = vpack.i.bf16 %v1827_v0, %v1323_v42  ;;  %v1081_v55 = vsel %vm882_vm8, %v3525_v54, %v1080_v63  ;;  %v1069_v37 = vsel %vm882_vm8, %v1037_v47, %v1068_v38  ;;  %v1571_v23 = vsel %vm882_vm8, %v1570_v52, %v1529_v13  ;;  %v847_v54 = vld [vmem:[#allocation3 + $0x130] sm:$0xff] }
 0x295   : > { %v1067_v32 = vsel %vm882_vm8, %v1066_v50, %v1025_v31  ;;  %v1585_v42 = vsel %vm882_vm8, %v3509_v57, %v1584_v18  ;;  %v1828_v2 = vrot.slane %v1789_v29, 4  ;;  %v1573_v46 = vsel %vm882_vm8, %v3545_v5, %v1572_v33  ;;  %v827_v47 = vld [vmem:[#allocation3 + $0x90] sm:$0xff] }
 0x296   : > { %2682 = vrot.lane.b32.xlu2 %v2681_v26, %s2880_s9  ;;  %v1280_v17 = vrot.slane %v3588_v12, 4  ;;  %v1325_v0 = vsel %vm882_vm8, %v1309_v48, %v1324_v62  ;;  %v3789_v38 = vperm.slane %v1081_v55, %v3304_v27  ;;  %v831_v57 = vld [vmem:[#allocation3 + $0xb0] sm:$0xff]  ;;  %v3793_v29 = vperm.slane %v1069_v37, %v3304_v27 }
 0x297   : > { %v3796_v5 = vperm.slane %v1067_v32, %v3304_v27  ;;  %v3799_v12 = vperm.slane %v1571_v23, %v3304_v27  ;;  %v3802_v48 = vperm.slane %v1585_v42, %v3304_v27  ;;  %v843_v18 = vld [vmem:[#allocation3 + $0x110] sm:$0xff]  ;;  %v1829_v33 = vsel %vm882_vm8, %v3707_v49, %v1828_v2 }
 0x298   : > { %v1498_v26 = vrot.slane %v3780_v60, 4  ;;  %v3808_v50 = vperm.slane %v1573_v46, %v3304_v27  ;;  %v1118_v62 = vrot.slane %v847_v54, 4  ;;  %v2626_v55 = vpack.i.bf16 %v1829_v33, %v1325_v0  ;;  %v3817_v46 = vld [vmem:[#allocation3 + $0x80] sm:$0xff] }
 0x299   : > { %4518 = vst [vmem:[#allocation31_spill] sm:$0xff] %v3796_v5  ;;  %v1008_v37 = vrot.slane %v827_v47, 4  ;;  %v1281_v32 = vsel %vm882_vm8, %v3534_v39, %v1280_v17  ;;  %v1784_v23 = vrot.slane %v3618_v61, 4  ;;  %v1006_v13 = vrot.slane %v831_v57, 4  ;;  %v853_v39 = vld [vmem:[#allocation3 + $0x160] sm:$0xff] }
 0x29a   : > { %4519 = vst [vmem:[#allocation32_spill] sm:$0xff] %v3799_v12  ;;  %v663_v42 = vpop.permute.xlu1 %662  ;;  %v1120_v2 = vrot.slane %v843_v18, 4  ;;  %v1119_v31 = vsel %vm882_vm8, %v1118_v62, %v843_v18  ;;  %v1510_v61 = vrot.slane %v832_v40, 4  ;;  %v3825_v18 = vperm.slane %v1281_v32, %v3304_v27  ;;  %v856_v21 = vld [vmem:[#allocation3 + $0x178] sm:$0xff] }
 0x29b   : > { %v610_v63 = vpop.permute.xlu0 %609  ;;  %v828_v52 = vld [vmem:[#allocation3 + $0x98] sm:$0xff]  ;;  %685 = vst.msk [vmem:[#allocation3 + $0x150] sm:$0xff] %vm467_vm6, %v663_v42  ;;  %2627 = vrot.lane.b32.xlu1 %v2626_v55, %s2884_s13  ;;  %v1009_v0 = vsel %vm882_vm8, %v831_v57, %v1008_v37  ;;  %v3830_v42 = vsel %vm882_vm8, %v3520_v19, %v1784_v23  ;;  %v849_v37 = vld [vmem:[#allocation3 + $0x140] sm:$0xff]  ;;  %v3833_v8 = vperm.slane %v1119_v31, %v3164_v28 }
 0x29c   : > { %634 = vst.msk [vmem:[#allocation3 + $0x100] sm:$0xff] %vm467_vm6, %v610_v63  ;;  %v826_v63 = vld [vmem:[#allocation3 + $0x88] sm:$0xff]  ;;  %v1512_v33 = vrot.slane %v828_v52, 4  ;;  %v1511_v55 = vsel %vm882_vm8, %v1510_v61, %v828_v52  ;;  %v848_v57 = vld [vmem:[#allocation3 + $0x138] sm:$0xff]  ;;  %v3837_v49 = vperm.slane %v1009_v0, %v3164_v28  ;;  %v1007_v32 = vsel %vm882_vm8, %v1006_v13, %v827_v47 }
 0x29d   : > { %v1499_v17 = vsel %vm882_vm8, %v1498_v26, %v826_v63  ;;  %v1500_v62 = vrot.slane %v826_v63, 4  ;;  %v1121_v63 = vsel %vm882_vm8, %v847_v54, %v1120_v2  ;;  %v3845_v23 = vperm.slane %v3471_v45, %v3304_v27  ;;  %v844_v61 = vld [vmem:[#allocation3 + $0x118] sm:$0xff]  ;;  %v3849_v26 = vld [vmem:[#allocation3 + $0x128] sm:$0xff] }
 0x29e   : > { %v1513_v52 = vsel %vm882_vm8, %v832_v40, %v1512_v33  ;;  %v1505_v19 = vperm.slane %v1499_v17, %v3164_v28  ;;  %v1517_v14 = vperm.slane %v1511_v55, %v3164_v28  ;;  %v850_v0 = vld [vmem:[#allocation3 + $0x148] sm:$0xff]  ;;  %v1132_v25 = vrot.slane %v849_v37, 4 }
 0x29f   : > { %v1622_v47 = vrot.slane %v848_v57, 4  ;;  %v1130_v13 = vrot.slane %v853_v39, 4  ;;  %v3852_v54 = vperm.slane %v1007_v32, %v3164_v28  ;;  %v854_v2 = vld [vmem:[#allocation3 + $0x168] sm:$0xff]  ;;  %v3856_v45 = vperm.slane %v1121_v63, %v3164_v28 }
 0x2a0   : > { %v1054_v55 = vrot.slane %v3837_v49, 4  ;;  %v1501_v31 = vsel %vm882_vm8, %v3780_v60, %v1500_v62  ;;  %v1521_v44 = vperm.slane %v1513_v52, %v3164_v28  ;;  %v1624_v30 = vrot.slane %v844_v61, 4 }
 0x2a1   : > { %v1548_v32 = vrot.slane %v1505_v19, 4  ;;  %v1636_v7 = vrot.slane %v850_v0, 4  ;;  %v1131_v63 = vsel %vm882_vm8, %v1130_v13, %v849_v37  ;;  %v1546_v1 = vrot.slane %v1517_v14, 4 }
 0x2a2   : > { %v550_v17 = vpop.permute.xlu1 %549  ;;  %v1133_v33 = vsel %vm882_vm8, %v853_v39, %v1132_v25  ;;  %v1623_v56 = vsel %vm882_vm8, %v1622_v47, %v844_v61  ;;  %v1634_v6 = vrot.slane %v854_v2, 4  ;;  %v1509_v60 = vperm.slane %v1501_v31, %v3164_v28  ;;  %v851_v25 = vld [vmem:[#allocation3 + $0x150] sm:$0xff] }
 0x2a3   : > { %570 = vst.msk [vmem:[#allocation3 + $0xa0] sm:$0xff] %vm467_vm6, %v550_v17  ;;  %v1549_v62 = vsel %vm882_vm8, %v1517_v14, %v1548_v32  ;;  %v1042_v52 = vrot.slane %v3852_v54, 4  ;;  %v1558_v40 = vrot.slane %v1521_v44, 4  ;;  %v1625_v16 = vsel %vm882_vm8, %v848_v57, %v1624_v30  ;;  %v3889_v32 = vld [vmem:[#allocation3 + $0x120] sm:$0xff] }
 0x2a4   : > { %v1648_v37 = vrot.slane %v852_v53, 4  ;;  %v1635_v13 = vsel %vm882_vm8, %v1634_v6, %v850_v0  ;;  %v3875_v39 = vperm.slane %v1133_v33, %v3164_v28  ;;  %v1637_v31 = vsel %vm882_vm8, %v854_v2, %v1636_v7 }
 0x2a5   : > { %v3879_v14 = vperm.slane %v1131_v63, %v3164_v28  ;;  %v3882_v61 = vperm.slane %v1623_v56, %v3164_v28  ;;  %v3885_v47 = vperm.slane %v1549_v62, %v3304_v27  ;;  %v1547_v30 = vsel %vm882_vm8, %v1546_v1, %v1505_v19 }
 0x2a6   : > { %v1649_v57 = vsel %vm882_vm8, %v856_v21, %v1648_v37  ;;  %v1142_v6 = vrot.slane %v855_v15, 4  ;;  %v1560_v0 = vrot.slane %v1509_v60, 4  ;;  %v3892_v33 = vperm.slane %v1625_v16, %v3164_v28 }
 0x2a7   : > { %v3895_v7 = vperm.slane %v1635_v13, %v3164_v28  ;;  %v1646_v2 = vrot.slane %v856_v21, 4  ;;  %v1559_v62 = vsel %vm882_vm8, %v1558_v40, %v1509_v60  ;;  %v1144_v17 = vrot.slane %v851_v25, 4 }
 0x2a8   : > { %v3899_v1 = vperm.slane %v1637_v31, %v3164_v28  ;;  %v1143_v19 = vsel %vm882_vm8, %v1142_v6, %v851_v25  ;;  %v4520_v16 = vrot.slane %v3817_v46, 4  ;;  %v3907_v13 = vperm.slane %v1547_v30, %v3304_v27 }
 0x2a9   : > { %v3910_v21 = vperm.slane %v1649_v57, %v3164_v28  ;;  %v4523_v60 = vrot.slane %v3808_v50, 4  ;;  %v1561_v31 = vsel %vm882_vm8, %v1521_v44, %v1560_v0  ;;  %v1106_v6 = vrot.slane %v3889_v32, 4 }
 0x2aa   : > { %v612_v56 = vpop.permute.xlu1 %611  ;;  %v829_v63 = vld [vmem:[#allocation3 + $0xa0] sm:$0xff]  ;;  %4521 = vst [vmem:[#allocation33_spill] sm:$0xff] %v3907_v13  ;;  %v3925_v57 = vperm.slane %v1143_v19, %v3164_v28  ;;  %v1145_v44 = vsel %vm882_vm8, %v855_v15, %v1144_v17  ;;  %v3934_v51 = vperm.slane %v1561_v31, %v3304_v27  ;;  %v4524_v15 = vrot.slane %v3765_v9, 4 }
 0x2ab   : > { %635 = vst.msk [vmem:[#allocation3 + $0x108] sm:$0xff] %vm467_vm6, %v612_v56  ;;  %v994_v37 = vrot.slane %v829_v63, 4  ;;  %v997_v24 = vsel %vm882_vm8, %v829_v63, %v4520_v16  ;;  %v1599_v25 = vsel %vm882_vm8, %v4523_v60, %v3885_v47  ;;  %v3920_v56 = vperm.slane %v1559_v62, %v3304_v27 }
 0x2ac   : > { %4522 = vst [vmem:[#allocation34_spill] sm:$0xff] %v3910_v21  ;;  %v1005_v40 = vperm.slane %v997_v24, %v3164_v28  ;;  %v1647_v24 = vsel %vm882_vm8, %v1646_v2, %v852_v53  ;;  %v1596_v62 = vrot.slane %v3907_v13, 4  ;;  %v1694_v19 = vrot.slane %v3910_v21, 4 }
 0x2ad   : > { %v995_v30 = vsel %vm882_vm8, %v994_v37, %v3817_v46  ;;  %v841_v46 = vld [vmem:[#allocation3 + $0x100] sm:$0xff]  ;;  %v3941_v2 = vperm.slane %v1647_v24, %v3164_v28 }
 0x2ae   : > { %v1055_v63 = vsel %vm882_vm8, %v1054_v55, %v1005_v40  ;;  %v1001_v16 = vperm.slane %v995_v30, %v3164_v28  ;;  %v1056_v60 = vrot.slane %v1005_v40, 4  ;;  %v4525_v40 = vrot.slane %v3768_v11, 4 }
 0x2af   : > { %v1061_v0 = vperm.slane %v1055_v63, %v3304_v27 }
 0x2b0   : > { %v1044_v37 = vrot.slane %v1001_v16, 4  ;;  %v1043_v53 = vsel %vm882_vm8, %v1042_v52, %v1001_v16  ;;  %v1057_v55 = vsel %vm882_vm8, %v3837_v49, %v1056_v60  ;;  %v1603_v31 = vsel %vm882_vm8, %v4525_v40, %v3920_v56 }
 0x2b1   : > { %v1099_v17 = vsel %vm882_vm8, %v4524_v15, %v1061_v0  ;;  %v3951_v30 = vperm.slane %v1043_v53, %v3304_v27  ;;  %v3954_v52 = vperm.slane %v1145_v44, %v3164_v28  ;;  %v1108_v16 = vrot.slane %v841_v46, 4 }
 0x2b2   : > { %v2646_v63 = vpack.i.bf16 %v1603_v31, %v1099_v17  ;;  %v1045_v49 = vsel %vm882_vm8, %v3852_v54, %v1044_v37  ;;  %v842_v24 = vld [vmem:[#allocation3 + $0x108] sm:$0xff]  ;;  %v1178_v60 = vrot.slane %v3925_v57, 4  ;;  %v3964_v40 = vperm.slane %v1057_v55, %v3304_v27 }
 0x2b3   : > { %4526 = vst [vmem:[#allocation35_spill] sm:$0xff] %v3951_v30  ;;  %v3960_v15 = vperm.slane %v1045_v49, %v3304_v27  ;;  %v1092_v13 = vrot.slane %v3951_v30, 4  ;;  %v1612_v53 = vrot.slane %v842_v24, 4  ;;  %v1597_v44 = vsel %vm882_vm8, %v3799_v12, %v1596_v62 }
 0x2b4   : > { %2647 = vrot.lane.b32.xlu0 %v2646_v63, %s2880_s9  ;;  %v1107_v54 = vsel %vm882_vm8, %v1106_v6, %v841_v46  ;;  %v4527_v37 = vrot.slane %v3849_v26, 4  ;;  %v1682_v31 = vrot.slane %v3941_v2, 4  ;;  %v4528_v49 = vrot.slane %v3793_v29, 4 }
 0x2b5   : > { %v1093_v30 = vsel %vm882_vm8, %v3796_v5, %v1092_v13  ;;  %v1190_v63 = vrot.slane %v3954_v52, 4  ;;  %v1613_v62 = vsel %vm882_vm8, %v3849_v26, %v1612_v53  ;;  %v4529_v12 = vrot.slane %v3789_v38, 4 }
 0x2b6   : > { %v1611_v17 = vsel %vm882_vm8, %v4527_v37, %v842_v24  ;;  %v1095_v55 = vsel %vm882_vm8, %v4528_v49, %v3960_v15  ;;  %v2686_v46 = vpack.i.bf16 %v1597_v44, %v1093_v30  ;;  %v1179_v24 = vsel %vm882_vm8, %v1178_v60, %v3879_v14 }
 0x2b7   : > { %v2631_v6 = vpack.i.bf16 %v1599_v25, %v1095_v55  ;;  %v3986_v37 = vperm.slane %v1611_v17, %v3164_v28  ;;  %v1103_v49 = vsel %vm882_vm8, %v4529_v12, %v3964_v40  ;;  %v1695_v13 = vsel %vm882_vm8, %v1694_v19, %v3899_v1 }
 0x2b8   : > { %v1658_v5 = vrot.slane %v3882_v61, 4  ;;  %v1100_v21 = vrot.slane %v1061_v0, 4  ;;  %2687 = vrot.lane.b32.xlu2 %v2686_v46, %s2882_s11  ;;  %v3998_v26 = vperm.slane %v1613_v62, %v3164_v28  ;;  %v1670_v25 = vrot.slane %v3892_v33, 4 }
 0x2b9   : > { %2632 = vrot.lane.b32.xlu1 %v2631_v6, %s2879_s8  ;;  %v4002_v30 = vperm.slane %v1107_v54, %v3164_v28  ;;  %v1683_v12 = vsel %vm882_vm8, %v1682_v31, %v3895_v7  ;;  %v4530_v19 = vrot.slane %v3802_v48, 4  ;;  %v1109_v60 = vsel %vm882_vm8, %v3889_v32, %v1108_v16 }
 0x2ba   : > { %v1191_v53 = vsel %vm882_vm8, %v1190_v63, %v3875_v39  ;;  %v4015_v44 = vperm.slane %v1179_v24, %v3304_v27  ;;  %v1659_v54 = vsel %vm882_vm8, %v1658_v5, %v3986_v37  ;;  %v4021_v31 = vsel %vm882_vm8, %v3765_v9, %v1100_v21 }
 0x2bb   : > { %v1607_v0 = vsel %vm882_vm8, %v4530_v19, %v3934_v51  ;;  %v1604_v55 = vrot.slane %v3920_v56, 4  ;;  %v4531_v62 = vrot.slane %v3692_v10, 4  ;;  %v4532_v16 = vrot.slane %v3662_v41, 4 }
 0x2bc   : > { %v2656_v17 = vpack.i.bf16 %v1607_v0, %v1103_v49  ;;  %v4033_v6 = vperm.slane %v1695_v13, %v3304_v27  ;;  %v1689_v5 = vperm.slane %v1683_v12, %v3304_v27  ;;  %v4038_v9 = vperm.slane %v1109_v60, %v3164_v28 }
 0x2bd   : > { %v1305_v32 = vsel %vm882_vm8, %v3680_v36, %v4531_v62  ;;  %v1809_v63 = vsel %vm882_vm8, %v3645_v35, %v4532_v16  ;;  %v1671_v10 = vsel %vm882_vm8, %v1670_v25, %v3998_v26  ;;  %v4533_v36 = vrot.slane %v3833_v8, 4 }
 0x2be   : > { %2657 = vrot.lane.b32.xlu0 %v2656_v17, %s2883_s12  ;;  %v4048_v35 = vsel %vm882_vm8, %v3768_v11, %v1604_v55  ;;  %v4051_v21 = vperm.slane %v1191_v53, %v3304_v27  ;;  %v1202_v56 = vrot.slane %v4015_v44, 4  ;;  %v1665_v28 = vperm.slane %v1659_v54, %v3304_v27 }
 0x2bf   : > { %v1155_v41 = vsel %vm882_vm8, %v4533_v36, %v4002_v30  ;;  %v2726_v46 = vpack.i.bf16 %v4048_v35, %v4021_v31  ;;  %v4534_v24 = vrot.slane %v3606_v22, 4  ;;  %v1882_v13 = vrot.slane %v3845_v23, 4  ;;  %v4558_v35 = vld [vmem:[#allocation31_spill] sm:$0xff] }
 0x2c0   : > { %v4063_v11 = vperm.slane %v3830_v42, %v3304_v27  ;;  %v1166_v25 = vrot.slane %v3856_v45, 4  ;;  %v4067_v12 = vperm.slane %v1305_v32, %v3304_v27  ;;  %v4070_v19 = vperm.slane %v1671_v10, %v3304_v27 }
 0x2c1   : > { %v1385_v49 = vsel %vm882_vm8, 0.0, %v4534_v24  ;;  %v1161_v0 = vperm.slane %v1155_v41, %v3304_v27  ;;  %v1706_v60 = vrot.slane %v1689_v5, 4  ;;  %v4535_v22 = vpack.i.bf16 %v3411_v59, %v3407_v58 }
 0x2c2   : > { %2023 = vrot.lane.b32.xlu2 %v1385_v49, %s2885_s14  ;;  %v1328_v42 = vrot.slane %v3825_v18, 4  ;;  %v4080_v53 = vperm.slane %v1809_v63, %v3304_v27  ;;  %v1167_v17 = vsel %vm882_vm8, %v1166_v25, %v4038_v9  ;;  %v1210_v54 = vrot.slane %v4051_v21, 4 }
 0x2c3   : > { %2637 = vrot.lane.b32.xlu1 %v4535_v22, %s2882_s11  ;;  %v1714_v55 = vrot.slane %v4033_v6, 4  ;;  %v4087_v62 = vsel %vm882_vm8, %v1202_v56, %v1161_v0  ;;  %v4090_v58 = vsel %vm882_vm8, %v1706_v60, %v1665_v28  ;;  %v1883_v59 = vsel %vm882_vm8, 0.0, %v1882_v13 }
 0x2c4   : > { %v1832_v32 = vrot.slane %v4063_v11, 4  ;;  %v1329_v16 = vsel %vm882_vm8, %v4067_v12, %v1328_v42  ;;  %v4097_v63 = vperm.slane %v1167_v17, %v3304_v27  ;;  %v1318_v36 = vrot.slane %v3710_v4, 4 }
 0x2c5   : > { %v1715_v10 = vsel %vm882_vm8, %v1714_v55, %v4070_v19  ;;  %v1822_v24 = vrot.slane %v3733_v20, 4  ;;  %v1096_v60 = vrot.slane %v3960_v15, 4  ;;  %v1600_v22 = vrot.slane %v3885_v47, 4 }
 0x2c6   : > { %2043 = vrot.lane.b32.xlu0 %v1883_v59, %s2882_s11  ;;  %v1833_v41 = vsel %vm882_vm8, %v4080_v53, %v1832_v32  ;;  %v1211_v56 = vsel %vm882_vm8, %v1210_v54, %v4097_v63  ;;  %v1319_v25 = vsel %vm882_vm8, %v1318_v36, %v3657_v34  ;;  %v1708_v17 = vrot.slane %v1665_v28, 4  ;;  %v4122_v59 = vpop.permute.xlu2 %2063 }
 0x2c7   : > { %v2641_v49 = vpack.i.bf16 %v1833_v41, %v1329_v16  ;;  %v2696_v13 = vpack.i.bf16 %v1715_v10, %v1211_v56  ;;  %v1823_v4 = vsel %vm882_vm8, %v1822_v24, %v3713_v3  ;;  %v1097_v20 = vsel %vm882_vm8, %v3793_v29, %v1096_v60  ;;  %v4536_v3 = vld [vmem:[#allocation10_spill] sm:$0xff]  ;;  %v4538_v10 = vld [vmem:[#allocation25_spill] sm:$0xff] }
 0x2c8   : > { %v2666_v42 = vpack.i.bf16 %v1823_v4, %v1319_v25  ;;  %v1601_v34 = vsel %vm882_vm8, %v3808_v50, %v1600_v22  ;;  %v1204_v15 = vrot.slane %v1161_v0, 4  ;;  %v1709_v55 = vsel %vm882_vm8, %v1689_v5, %v1708_v17  ;;  %v4540_v56 = vld [vmem:[#allocation22_spill] sm:$0xff]  ;;  %v4541_v24 = vld [vmem:[#allocation21_spill] sm:$0xff] }
 0x2c9   : > { %v2706_v54 = vpack.i.bf16 %v1601_v34, %v1097_v20  ;;  %v4537_v47 = vpack.i.bf16 %v3393_v43, %v4536_v3  ;;  %v1180_v29 = vrot.slane %v3879_v14, 4  ;;  %v1660_v28 = vrot.slane %v3986_v37, 4  ;;  %v4543_v17 = vld [vmem:[#allocation34_spill] sm:$0xff] }
 0x2ca   : > { %2697 = vrot.lane.b32.xlu2 %v2696_v13, %s2880_s9  ;;  %v1684_v32 = vrot.slane %v3895_v7, 4  ;;  %v1205_v50 = vsel %vm882_vm8, %v4015_v44, %v1204_v15  ;;  %v1156_v5 = vrot.slane %v4002_v30, 4  ;;  %v1380_v36 = vrot.slane %v4538_v10, 4 }
 0x2cb   : > { %2642 = vrot.lane.b32.xlu1 %v2641_v49, %s2885_s14  ;;  %v2671_v0 = vpack.i.bf16 %v1709_v55, %v1205_v50  ;;  %v1181_v16 = vsel %vm882_vm8, %v3925_v57, %v1180_v29  ;;  %v1661_v14 = vsel %vm882_vm8, %v3882_v61, %v1660_v28  ;;  %v4539_v57 = vld [vmem:[#allocation23_spill] sm:$0xff]  ;;  %v4542_v49 = vpack.i.bf16 %v4540_v56, %v4541_v24 }
 0x2cc   : > { %v1685_v43 = vsel %vm882_vm8, %v3941_v2, %v1684_v32  ;;  %v1189_v7 = vperm.slane %v1181_v16, %v3304_v27  ;;  %v1157_v30 = vsel %vm882_vm8, %v3833_v8, %v1156_v5  ;;  %v1381_v44 = vsel %vm882_vm8, 0.0, %v1380_v36  ;;  %v4545_v50 = vld [vmem:[#allocation11_spill] sm:$0xff] }
 0x2cd   : > { %v1693_v37 = vperm.slane %v1685_v43, %v3304_v27  ;;  %v1886_v41 = vrot.slane %v4539_v57, 4  ;;  %v1669_v2 = vperm.slane %v1661_v14, %v3304_v27  ;;  %v1168_v61 = vrot.slane %v4038_v9, 4  ;;  %v4547_v57 = vld [vmem:[#allocation29_spill] sm:$0xff] }
 0x2ce   : > { %2667 = vrot.lane.b32.xlu0 %v2666_v42, %s2879_s8  ;;  %v1192_v13 = vrot.slane %v3875_v39, 4  ;;  %v1672_v25 = vrot.slane %v3998_v26, 4  ;;  %v1696_v8 = vrot.slane %v3899_v1, 4  ;;  %v1165_v60 = vperm.slane %v1157_v30, %v3304_v27  ;;  %v4160_v42 = vpop.permute.xlu2 %2103 }
 0x2cf   : > { %v1206_v4 = vrot.slane %v1189_v7, 4  ;;  %v1710_v22 = vrot.slane %v1693_v37, 4  ;;  %v1887_v9 = vsel %vm882_vm8, 0.0, %v1886_v41  ;;  %v1712_v15 = vrot.slane %v1669_v2, 4 }
 0x2d0   : > { %v1193_v20 = vsel %vm882_vm8, %v3954_v52, %v1192_v13  ;;  %v1697_v34 = vsel %vm882_vm8, %v4543_v17, %v1696_v8  ;;  %v1169_v1 = vsel %vm882_vm8, %v3856_v45, %v1168_v61  ;;  %v1673_v26 = vsel %vm882_vm8, %v3892_v33, %v1672_v25  ;;  %v4544_v45 = vld [vmem:[#allocation18_spill] sm:$0xff]  ;;  %v4549_v17 = vld [vmem:[#allocation12_spill] sm:$0xff] }
 0x2d1   : > { %v1711_v39 = vsel %vm882_vm8, %v1710_v22, %v1669_v2  ;;  %v1208_v55 = vrot.slane %v1165_v60, 4  ;;  %v1201_v52 = vperm.slane %v1193_v20, %v3304_v27  ;;  %v1705_v3 = vperm.slane %v1697_v34, %v3304_v27 }
 0x2d2   : > { %2707 = vrot.lane.b32.xlu2 %v2706_v54, %s2881_s10  ;;  %v1207_v54 = vsel %vm882_vm8, %v1206_v4, %v1165_v60  ;;  %v1713_v29 = vsel %vm882_vm8, %v1693_v37, %v1712_v15  ;;  %v1681_v28 = vperm.slane %v1673_v26, %v3304_v27  ;;  %v1104_v32 = vrot.slane %v3964_v40, 4  ;;  %v4552_v15 = vld [vmem:[#allocation28_spill] sm:$0xff] }
 0x2d3   : > { %2662 = vrot.lane.b32.xlu1 %v4537_v47, %s2884_s13  ;;  %v2676_v47 = vpack.i.bf16 %v1711_v39, %v1207_v54  ;;  %v4546_v33 = vpack.i.bf16 %v4544_v45, %v4545_v50  ;;  %v1209_v5 = vsel %vm882_vm8, %v1189_v7, %v1208_v55  ;;  %v1214_v16 = vrot.slane %v1201_v52, 4  ;;  %v4555_v50 = vld [vmem:[#allocation20_spill] sm:$0xff] }
 0x2d4   : > { %v1718_v43 = vrot.slane %v1705_v3, 4  ;;  %v1608_v10 = vrot.slane %v3934_v51, 4  ;;  %v2691_v36 = vpack.i.bf16 %v1713_v29, %v1209_v5  ;;  %v1105_v40 = vsel %vm882_vm8, %v3789_v38, %v1104_v32 }
 0x2d5   : > { %v1888_v41 = vrot.slane %v4547_v57, 4  ;;  %v1720_v51 = vrot.slane %v1681_v28, 4  ;;  %v1326_v24 = vrot.slane %v4067_v12, 4  ;;  %v1830_v61 = vrot.slane %v4080_v53, 4 }
 0x2d6   : > { %2672 = vrot.lane.b32.xlu0 %v2671_v0, %s2882_s11  ;;  %v1177_v0 = vperm.slane %v1169_v1, %v3304_v27  ;;  %v1719_v14 = vsel %vm882_vm8, %v1718_v43, %v1681_v28  ;;  %v4190_v37 = vpop.permute.xlu2 %2652  ;;  %v1609_v27 = vsel %vm882_vm8, %v3802_v48, %v1608_v10  ;;  %v1716_v12 = vrot.slane %v4070_v19, 4  ;;  %s2537_s11 = sshll.u32 %s2862_s18, 4  ;;  %s2808_s18 = scalar_lea.hbm %s4459_s3, 32 }
 0x2d7   : > { %v1889_v38 = vsel %vm882_vm8, 0.0, %v1888_v41  ;;  %v1721_v56 = vsel %vm882_vm8, %v1705_v3, %v1720_v51  ;;  %v1327_v25 = vsel %vm882_vm8, %v1326_v24, %v3825_v18  ;;  %v1831_v8 = vsel %vm882_vm8, %v1830_v61, %v4063_v11  ;;  %v4548_v18 = vld [vmem:[#allocation19_spill] sm:$0xff]  ;;  %v4561_v41 = vld [vmem:[#allocation33_spill] sm:$0xff] }
 0x2d8   : > { %v1215_v30 = vsel %vm882_vm8, %v1214_v16, %v1177_v0  ;;  %v1216_v2 = vrot.slane %v1177_v0, 4  ;;  %v2701_v60 = vpack.i.bf16 %v1831_v8, %v1327_v25  ;;  %v1212_v4 = vrot.slane %v4097_v63, 4  ;;  %v4551_v63 = vld [vmem:[#allocation30_spill] sm:$0xff] }
 0x2d9   : > { %v2721_v7 = vpack.i.bf16 %v1719_v14, %v1215_v30  ;;  %v1717_v53 = vsel %vm882_vm8, %v4033_v6, %v1716_v12  ;;  %v4550_v34 = vpack.i.bf16 %v4548_v18, %v4549_v17  ;;  %v1314_v39 = vrot.slane %v4551_v63, 4 }
 0x2da   : > { %2717 = vrot.lane.b32.xlu2 %v4542_v49, %s2879_s8  ;;  %v1217_v48 = vsel %vm882_vm8, %v1201_v52, %v1216_v2  ;;  %v1213_v11 = vsel %vm882_vm8, %v4051_v21, %v1212_v4  ;;  %v1818_v1 = vrot.slane %v4552_v15, 4  ;;  %v4553_v52 = vld [vmem:[#allocation26_spill] sm:$0xff] }
 0x2db   : > { %1943 = vrot.lane.b32.xlu1 %v1381_v44, %s2881_s10  ;;  %v2741_v44 = vpack.i.bf16 %v1609_v27, %v1105_v40  ;;  %v2731_v13 = vpack.i.bf16 %v1721_v56, %v1217_v48  ;;  %v1315_v3 = vsel %vm882_vm8, %v1314_v39, %v4553_v52  ;;  %v4559_v40 = vld [vmem:[#allocation32_spill] sm:$0xff] }
 0x2dc   : > { %v1594_v30 = vrot.slane %v4559_v40, 4 }
 0x2de   : > { %2123 = vrot.lane.b32.xlu0 %v1887_v9, %s2884_s13  ;;  %v4202_v49 = vpop.permute.xlu2 %1903  ;;  %v2711_v9 = vpack.i.bf16 %v1717_v53, %v1213_v11  ;;  %v1595_v51 = vsel %vm882_vm8, %v1594_v30, %v4561_v41 }
 0x2e2   : > { %2737 = vrot.lane.b32.xlu2 %v4546_v33, %s2880_s9  ;;  %v4556_v33 = vld [vmem:[#allocation13_spill] sm:$0xff]  ;;  %s2477_s9 = sshll.u32 %s2987_s24, 4 }
 0x2e3   : > { %2677 = vrot.lane.b32.xlu1 %v2676_v47, %s2879_s8  ;;  %v4554_v47 = vld [vmem:[#allocation27_spill] sm:$0xff]  ;;  %v4557_v0 = vpack.i.bf16 %v4555_v50, %v4556_v33  ;;  %s4407_s8 = scalar_lea.vmem %s4460_s4, %s2478_s25 }
 0x2e4   : > { %v1819_v21 = vsel %vm882_vm8, %v1818_v1, %v4554_v47  ;;  %v4564_v47 = vld [vmem:[#allocation14_spill] sm:$0xff]  ;;  %v4565_v50 = vld [vmem:[#allocation15_spill] sm:$0xff] }
 0x2e6   : > { %2692 = vrot.lane.b32.xlu0 %v2691_v36, %s2881_s10  ;;  %v4215_v22 = vpop.permute.xlu2 %2083  ;;  %s232_s10 = scalar_lea.vmem [#allocation7], %s2477_s9 }
 0x2e7   : > { %s2349_s21 = sshll.u32 %s232_s10, 4  ;;  %s2350_s21 = int_to_ptr.vmem [resolvable:$true] %s2349_s21 }
 0x2ea   : > { %2742 = vrot.lane.b32.xlu2 %v2741_v44, %s2885_s14  ;;  %v4560_v44 = vld [vmem:[#allocation35_spill] sm:$0xff] }
 0x2eb   : > { %2722 = vrot.lane.b32.xlu1 %v2721_v7, %s2883_s12 }
 0x2ed   : > { %v4227_v19 = vpop.permute.xlu1 %1923 }
 0x2ee   : > { %2163 = vrot.lane.b32.xlu0 %v1889_v38, %s2885_s14  ;;  %v4232_v6 = vpop.permute.xlu2 %1983 }
 0x2f0   : > { %v4219_v20 = vpop.permute.xlu0 %2003 }
 0x2f3   : > { %2732 = vrot.lane.b32.xlu1 %v2731_v13, %s2885_s14 }
 0x2f5   : > { %v4244_v32 = vpop.permute.xlu1 %1963 }
 0x2f6   : > { %2702 = vrot.lane.b32.xlu0 %v2701_v60, %s2883_s12  ;;  %v4250_v45 = vpop.permute.xlu2 %2682 }
 0x2fb   : > { %2752 = vrot.lane.b32.xlu1 %v4550_v34, %s2885_s14  ;;  %v4562_v34 = vld [vmem:[#allocation17_spill] sm:$0xff]  ;;  %s2347_s14 = scalar_lea.hbm %s4459_s3, %s2537_s11 }
 0x2fc   : > { %v1482_v11 = vrot.slane %v4562_v34, 4  ;;  %s2351_s22 = sshll.u32 %s2347_s14, 4  ;;  %s2352_s22 = int_to_ptr.hbm [resolvable:$true] %s2351_s22 }
 0x2fd   : > { %v4256_v5 = vpop.permute.xlu1 %2143  ;;  %s2802_s6 = sshra.s32 %s2352_s22, 4  ;;  %s2803_s6 = int_to_ptr.hbm [resolvable:$true] %s2802_s6 }
 0x2fe   : > { %2712 = vrot.lane.b32.xlu0 %v2711_v9, %s2884_s13  ;;  %v4563_v9 = vld [vmem:[#allocation16_spill] sm:$0xff]  ;;  %v1483_v33 = vsel %vm882_vm8, %v1482_v11, %v4565_v50  ;;  %s2804_s7 = scalar_lea.hbm %s2803_s6, 16  ;;  %p2809_p8 = scmp.lt.s32.totalorder %s2803_s6, %s4459_s3 }
 0x2ff   : > { %v978_v63 = vrot.slane %v4563_v9, 4  ;;  %p2805_p5 = scmp.ne.s32.totalorder %s2803_s6, %s2804_s7  ;;  %p2810_p10 = scmp.lt.s32.totalorder %s2808_s18, %s2804_s7 }
 0x301   : > { %p2806_p6 = pnand %p2805_p5, %p2964_p9  ;;  %p2811_p13 = por %p2810_p10, %p2809_p8 }
 0x302   : > { %v2618_v26 = vpop.permute.xlu0 %2617 }
 0x303   : > { %v2620_v54 = vunpack.i.h.bf16 %v2618_v26  ;;  %v2619_v55 = vunpack.i.l.bf16 %v2618_v26  ;;  %p2807_p7 = pneg %p2806_p6 }
 0x305   : > { %v4239_v29 = vsel %vm467_vm6, %v1315_v3, %v2619_v55  ;;  %v4242_v28 = vsel %vm467_vm6, %v1819_v21, %v2620_v54  ;;  %v4258_v43 = vpop.permute.xlu1 %2622  ;;  %v979_v21 = vsel %vm882_vm8, %v978_v63, %v4564_v47  ;;  %v2886_v47 = vmov 0   ;;  %p2812_p0 = pnand %p2811_p13, %p2807_p7 }
 0x306   : > { %2727 = vrot.lane.b32.xlu0 %v2726_v46, %s2884_s13  ;;  %v1090_v46 = vrot.slane %v4558_v35, 4  ;;  %2756 = vset.pattern.permute.xlu2 %v2886_v47 }
 0x307   : > { %2757 = vset.pattern.permute.xlu0 %v2886_v47 }
 0x308   : > { %v1091_v57 = vsel %vm882_vm8, %v1090_v46, %v4560_v44 }
 0x30d   : > { %v4262_v36 = vpop.permute.xlu1 %2627 }
 0x30e   : > { %2747 = vrot.lane.b32.xlu0 %v4557_v0, %s2883_s12  ;;  %v2655_v0 = vunpack.i.h.bf16 %v4190_v37 }
 0x312   : > { %v2688_v16 = vpop.permute.xlu2 %2687 }
 0x313   : > { %v2690_v27 = vunpack.i.h.bf16 %v2688_v16  ;;  %v2689_v7 = vunpack.i.l.bf16 %v2688_v16  ;;  %v2654_v16 = vunpack.i.l.bf16 %v4190_v37 }
 0x315   : > { %v2212_v13 = vsel %vm467_vm6, %v1595_v51, %v2690_v27  ;;  %v2171_v25 = vsel %vm467_vm6, %v1091_v57, %v2689_v7  ;;  %v2625_v51 = vunpack.i.h.bf16 %v4258_v43 }
 0x31c   : > { %v4260_v10 = vpop.permute.xlu2 %2023 }
 0x324   : > { %v4264_v14 = vpop.permute.xlu2 %2697 }
 0x326   : > { %v2648_v31 = vpop.permute.xlu0 %2647 }
 0x327   : > { %v2650_v12 = vunpack.i.h.bf16 %v2648_v31  ;;  %v2649_v4 = vunpack.i.l.bf16 %v2648_v31 }
 0x32b   : > { %v2633_v2 = vpop.permute.xlu1 %2632 }
 0x32c   : > { %v2708_v38 = vpop.permute.xlu2 %2707  ;;  %v2635_v56 = vunpack.i.h.bf16 %v2633_v2  ;;  %v2634_v24 = vunpack.i.l.bf16 %v2633_v2  ;;  %v2624_v2 = vunpack.i.l.bf16 %v4258_v43  ;;  %v2629_v43 = vunpack.i.l.bf16 %v4262_v36 }
 0x32d   : > { %v2710_v48 = vunpack.i.h.bf16 %v2708_v38  ;;  %v2709_v61 = vunpack.i.l.bf16 %v2708_v38  ;;  %v2685_v38 = vunpack.i.h.bf16 %v4250_v45 }
 0x32e   : > { %v2177_v8 = vsel %vm2175_vm10, %v2171_v25, %v2634_v24  ;;  %v2217_v60 = vsel %vm2175_vm10, %v2212_v13, %v2635_v56 }
 0x32f   : > { %v2183_v53 = vsel %vm2181_vm9, %v2177_v8, %v2709_v61  ;;  %v2222_v18 = vsel %vm2181_vm9, %v2217_v60, %v2710_v48  ;;  %v2684_v48 = vunpack.i.l.bf16 %v4250_v45  ;;  %v2630_v8 = vunpack.i.h.bf16 %v4262_v36 }
 0x330   : > { %v4278_v17 = vpop.permute.xlu0 %2657  ;;  %v4283_v39 = vsel %vm2187_vm11, %v2183_v53, %v2649_v4  ;;  %v4286_v15 = vsel %vm2187_vm11, %v2222_v18, %v2650_v12  ;;  %v4566_v4 = vld [vmem:[#allocation24_spill] sm:$0xff] }
 0x331   : > { %v2174_v53 = vsel %vm467_vm6, %v4566_v4, %v4202_v49 }
 0x332   : > { %v2180_v18 = vsel %vm2175_vm10, %v2174_v53, %v4227_v19 }
 0x334   : > { %v2718_v26 = vpop.permute.xlu2 %2717 }
 0x335   : > { %v2638_v1 = vpop.permute.xlu1 %2637  ;;  %v2720_v52 = vunpack.i.h.bf16 %v2718_v26  ;;  %v2719_v3 = vunpack.i.l.bf16 %v2718_v26 }
 0x336   : > { %v2640_v54 = vunpack.i.h.bf16 %v2638_v1  ;;  %v2639_v55 = vunpack.i.l.bf16 %v2638_v1 }
 0x338   : > { %v2211_v31 = vsel %vm467_vm6, %v1483_v33, %v2640_v54  ;;  %v2170_v35 = vsel %vm467_vm6, %v979_v21, %v2639_v55  ;;  %v2044_v30 = vpop.permute.xlu0 %2043 }
 0x339   : > { %v2216_v46 = vsel %vm2175_vm10, %v2211_v31, %v2720_v52  ;;  %v2176_v40 = vsel %vm2175_vm10, %v2170_v35, %v2719_v3  ;;  %v2215_v19 = vsel %vm467_vm6, %v3845_v23, %v2044_v30 }
 0x33a   : > { %v4299_v27 = vsel %vm2181_vm9, %v2176_v40, %v2654_v16  ;;  %v4302_v7 = vsel %vm2181_vm9, %v2216_v46, %v2655_v0  ;;  %v2220_v26 = vsel %vm2175_vm10, %v2215_v19, %v4122_v59  ;;  %v2246_v59 = vld [vmem:[%s4458_s2] sm:$0xff]  ;;  %v2659_v19 = vunpack.i.l.bf16 %v4278_v17 }
 0x33b   : > { %v2225_v54 = vsel %vm2181_vm9, %v2220_v26, %v4215_v22  ;;  %2249 = vperm.xlu2 %2756, %v2246_v59  }
 0x33d   : > { %v4304_v44 = vpop.permute.xlu1 %2642 }
 0x33e   : > { %v2645_v0 = vunpack.i.h.bf16 %v4304_v44 }
 0x340   : > { %v2668_v57 = vpop.permute.xlu0 %2667 }
 0x341   : > { %v2670_v41 = vunpack.i.h.bf16 %v2668_v57  ;;  %v2669_v37 = vunpack.i.l.bf16 %v2668_v57 }
 0x343   : > { %v2219_v56 = vsel %vm2175_vm10, %v4242_v28, %v2670_v41  ;;  %v2179_v24 = vsel %vm2175_vm10, %v4239_v29, %v2669_v37 }
 0x344   : > { %v2224_v61 = vsel %vm2181_vm9, %v2219_v56, %v2625_v51  ;;  %v2185_v13 = vsel %vm2181_vm9, %v2179_v24, %v2624_v2 }
 0x345   : > { %v4316_v25 = vpop.permute.xlu1 %2662  ;;  %v2191_v60 = vsel %vm2187_vm11, %v2185_v13, %v2684_v48  ;;  %v2229_v28 = vsel %vm2187_vm11, %v2224_v61, %v2685_v38  ;;  %v2700_v48 = vunpack.i.h.bf16 %v4264_v14  ;;  %v2699_v61 = vunpack.i.l.bf16 %v4264_v14 }
 0x346   : > { %v2197_v12 = vsel %vm2193_vm12, %v2191_v60, %v2629_v43  ;;  %v2234_v29 = vsel %vm2193_vm12, %v2229_v28, %v2630_v8  ;;  %v2664_v59 = vunpack.i.l.bf16 %v4316_v25 }
 0x348   : > { %v2673_v45 = vpop.permute.xlu0 %2672 }
 0x349   : > { %v2674_v21 = vunpack.i.l.bf16 %v2673_v45 }
 0x34b   : > { %v2172_v51 = vsel %vm467_vm6, %v4087_v62, %v2674_v21 }
 0x34d   : > { %v1944_v34 = vpop.permute.xlu1 %1943 }
 0x34e   : > { %v2186_v11 = vsel %vm2181_vm9, %v2180_v18, %v1944_v34 }
 0x34f   : > { %v2192_v36 = vsel %vm2187_vm11, %v2186_v11, %v4244_v32 }
 0x350   : > { %v2198_v9 = vsel %vm2193_vm12, %v2192_v36, %v4232_v6  ;;  %v2124_v63 = vpop.permute.xlu0 %2123  ;;  %v2230_v6 = vsel %vm2187_vm11, %v2225_v54, %v4160_v42  ;;  %v2675_v42 = vunpack.i.h.bf16 %v2673_v45 }
 0x351   : > { %v2204_v1 = vsel %vm2199_vm13, %v2198_v9, %v4219_v20  ;;  %v2235_v20 = vsel %vm2193_vm12, %v2230_v6, %v2124_v63 }
 0x352   : > { %v2210_v49 = vsel %vm2205_vm14, %v2204_v1, %v4260_v10  ;;  %v2240_v10 = vsel %vm2199_vm13, %v2235_v20, %v4256_v5  ;;  %v2644_v5 = vunpack.i.l.bf16 %v4304_v44  ;;  %v2213_v37 = vsel %vm467_vm6, %v4090_v58, %v2675_v42  ;;  %v2738_v44 = vpop.permute.xlu2 %2737 }
 0x353   : > { %2527 = vmatpush.msk.msra.mxu0 %vm2256_vm15, %v2210_v49  ;;  %v2660_v49 = vunpack.i.h.bf16 %v4278_v17  ;;  %v2665_v17 = vunpack.i.h.bf16 %v4316_v25 }
 0x355   : > { %v2678_v55 = vpop.permute.xlu1 %2677 }
 0x356   : > { %v2680_v16 = vunpack.i.h.bf16 %v2678_v55  ;;  %v2679_v31 = vunpack.i.l.bf16 %v2678_v55 }
 0x358   : > { %v2693_v32 = vpop.permute.xlu0 %2692  ;;  %v2218_v2 = vsel %vm2175_vm10, %v2213_v37, %v2680_v16  ;;  %v2178_v38 = vsel %vm2175_vm10, %v2172_v51, %v2679_v31 }
 0x359   : > { %v2695_v35 = vunpack.i.h.bf16 %v2693_v32  ;;  %v2694_v46 = vunpack.i.l.bf16 %v2693_v32 }
 0x35a   : > { %v2743_v36 = vpop.permute.xlu2 %2742 }
 0x35b   : > { %v2184_v56 = vsel %vm2181_vm9, %v2178_v38, %v2694_v46  ;;  %v2223_v24 = vsel %vm2181_vm9, %v2218_v2, %v2695_v35  ;;  %v2745_v26 = vunpack.i.h.bf16 %v2743_v36  ;;  %v2744_v32 = vunpack.i.l.bf16 %v2743_v36 }
 0x35c   : > { %v2190_v28 = vsel %vm2187_vm11, %v2184_v56, %v2699_v61  ;;  %v2887_v35 = vmov 0.0  }
 0x35d   : > { %v2723_v23 = vpop.permute.xlu1 %2722  ;;  %249 = vst.msk [vmem:[%s4407_s8] sm:$0xff] %vm248_vm1, %v2887_v35 }
 0x35e   : > { %v2725_v62 = vunpack.i.h.bf16 %v2723_v23  ;;  %v2724_v60 = vunpack.i.l.bf16 %v2723_v23 }
 0x360   : > { %v2164_v52 = vpop.permute.xlu0 %2163 }
 0x361   : > { %v2245_v3 = vsel %vm2205_vm14, %v2240_v10, %v2164_v52  ;;  %v2740_v52 = vunpack.i.h.bf16 %v2738_v44  ;;  %v2739_v10 = vunpack.i.l.bf16 %v2738_v44 }
 0x362   : > { %2529 = vmatpush.msk.msra.mxu1 %vm2256_vm15, %v2245_v3 }
 0x364   : > { %v2316_v51 = vld [vmem:[%s4407_s8] sm:$0xff] }
 0x365   : > { %v2733_v13 = vpop.permute.xlu1 %2732 }
 0x366   : > { %v2734_v45 = vunpack.i.l.bf16 %v2733_v13 }
 0x368   : > { %v2703_v22 = vpop.permute.xlu0 %2702 }
 0x369   : > { %v2705_v50 = vunpack.i.h.bf16 %v2703_v22  ;;  %v2704_v33 = vunpack.i.l.bf16 %v2703_v22  ;;  %v2226_v22 = vsel %vm2187_vm11, %v4302_v7, %v2740_v52 }
 0x36a   : > { %v2231_v25 = vsel %vm2193_vm12, %v2226_v22, %v2665_v17 }
 0x36b   : > { %v2203_v40 = vsel %vm2199_vm13, %v2197_v12, %v2704_v33  ;;  %v2239_v30 = vsel %vm2199_vm13, %v2234_v29, %v2705_v50  ;;  %v2228_v12 = vsel %vm2187_vm11, %v2223_v24, %v2700_v48  ;;  %v2735_v29 = vunpack.i.h.bf16 %v2733_v13 }
 0x36c   : > { %v2209_v57 = vsel %vm2205_vm14, %v2203_v40, %v2644_v5  ;;  %v2244_v41 = vsel %vm2205_vm14, %v2239_v30, %v2645_v0 }
 0x36d   : > { %2275 = vmatpush.msra.mxu0 %v2209_v57  ;;  %2295 = vmatpush.msra.mxu1 %v2244_v41 }
 0x370   : > { %v2713_v58 = vpop.permute.xlu0 %2712 }
 0x371   : > { %v2715_v8 = vunpack.i.h.bf16 %v2713_v58  ;;  %v2714_v43 = vunpack.i.l.bf16 %v2713_v58 }
 0x373   : > { %v2196_v4 = vsel %vm2193_vm12, %v2190_v28, %v2714_v43  ;;  %v2233_v53 = vsel %vm2193_vm12, %v2228_v12, %v2715_v8 }
 0x374   : > { %v2202_v18 = vsel %vm2199_vm13, %v2196_v4, %v2724_v60  ;;  %v2238_v14 = vsel %vm2199_vm13, %v2233_v53, %v2725_v62 }
 0x375   : > { %v2208_v34 = vsel %vm2205_vm14, %v2202_v18, %v2734_v45  ;;  %v2243_v11 = vsel %vm2205_vm14, %v2238_v14, %v2735_v29 }
 0x376   : > { %2276 = vmatpush.msra.mxu0 %v2208_v34  ;;  %2296 = vmatpush.msra.mxu1 %v2243_v11 }
 0x378   : > { %v2728_v9 = vpop.permute.xlu0 %2727 }
 0x379   : > { %v2730_v63 = vunpack.i.h.bf16 %v2728_v9  ;;  %v2729_v1 = vunpack.i.l.bf16 %v2728_v9 }
 0x37b   : > { %v2195_v54 = vsel %vm2193_vm12, %v4283_v39, %v2729_v1  ;;  %v2232_v6 = vsel %vm2193_vm12, %v4286_v15, %v2730_v63  ;;  %v2753_v39 = vpop.permute.xlu1 %2752  ;;  %v2188_v15 = vsel %vm2187_vm11, %v4299_v27, %v2739_v10  ;;  %v808_v27 = vld [vmem:[%s4457_s1] sm:$0xff] }
 0x37c   : > { %v2201_v55 = vsel %vm2199_vm13, %v2195_v54, %v2659_v19  ;;  %v2237_v20 = vsel %vm2199_vm13, %v2232_v6, %v2660_v49  ;;  %v2755_v50 = vunpack.i.h.bf16 %v2753_v39  ;;  %v2754_v33 = vunpack.i.l.bf16 %v2753_v39 }
 0x37d   : > { %v2207_v3 = vsel %vm2205_vm14, %v2201_v55, %v2744_v32  ;;  %v2242_v23 = vsel %vm2205_vm14, %v2237_v20, %v2745_v26  ;;  %v2194_v0 = vsel %vm2193_vm12, %v2188_v15, %v2664_v59 }
 0x37e   : > { %2277 = vmatpush.msra.mxu0 %v2207_v3  ;;  %2297 = vmatpush.msra.mxu1 %v2242_v23 }
 0x380   : > { %v2748_v47 = vpop.permute.xlu0 %2747 }
 0x381   : > { %v2750_v42 = vunpack.i.h.bf16 %v2748_v47  ;;  %v2749_v21 = vunpack.i.l.bf16 %v2748_v47 }
 0x383   : > { %v2200_v5 = vsel %vm2199_vm13, %v2194_v0, %v2749_v21  ;;  %v2236_v16 = vsel %vm2199_vm13, %v2231_v25, %v2750_v42 }
 0x384   : > { %v2206_v7 = vsel %vm2205_vm14, %v2200_v5, %v2754_v33  ;;  %v2241_v31 = vsel %vm2205_vm14, %v2236_v16, %v2755_v50 }
 0x385   : > { %2278 = vmatpush.msra.mxu0 %v2206_v7  ;;  %2298 = vmatpush.msra.mxu1 %v2241_v31 }
 0x386   : > { %2528 = vmatmul.msk.f32.vlgmr.msra.gmra.mxu0 %vm2252_vm0, %v808_v27  ;;  %2530 = vmatmul.msk.f32.vlgmr.msra.gmra.mxu1 %vm2252_vm0, %v808_v27 }
 0x395   : > { %v2250_v46 = vpop.permute.xlu2 %2249 }
 0x403   : > { %v2280_v40 = vpop.f32.mrf.mxu0  ;;  %v2300_v30 = vpop.f32.mrf.mxu1 }
 0x404   : > { %v2281_v57 = vadd.f32 %v2280_v40, %v2250_v46  ;;  %v2301_v41 = vadd.f32 %v2300_v30, %v2250_v46 }
 0x406   : > { %2303 = vst [vmem:[%s232_s10] sm:$0xff] %v2281_v57  ;;  %v2305_v37 = vadd.f32 %v2301_v41, %v2281_v57 }
 0x407   : > { %2304 = vst [vmem:[%s232_s10 + $0x8] sm:$0xff] %v2301_v41 }
 0x408   : > { %2306 = vadd.xlane.f32.xlu0 %v2305_v37 }
 0x47b   : > { %v2307_v44 = vpop.xlane.xlu0 %2306 }
 0x47c   : > { %v2308_v2 = vmul.f32 0.00390625, %v2307_v44  ;;  %v2317_v38 = vadd.f32 %v2316_v51, %v2307_v44 }
 0x47e   : > { %2319 = vst.msk [vmem:[%s4407_s8] sm:$0xff] %vm369_vm3, %v2317_v38  ;;  %v2325_v56 = vmul.f32 %v2308_v2, %v2307_v44  ;;  %v2309_v24 = vsub.f32 %v2281_v57, %v2308_v2  ;;  %v2310_v48 = vsub.f32 %v2301_v41, %v2308_v2 }
 0x480   : > { %v2311_v61 = vmul.f32 %v2309_v24, %v2309_v24  ;;  %v2312_v13 = vmul.f32 %v2310_v48, %v2310_v48 }
 0x482   : > { %v2313_v58 = vadd.f32 %v2312_v13, %v2311_v61 }
 0x484   : > { %2314 = vadd.xlane.f32.xlu1 %v2313_v58 }
 0x485   : > { %2815 = shalt.err (!%p2812_p0)
}
 0x486   : > { %2540 = dma.vmem_to_hbm [thread:$0]  (%p2964_p9), %s2350_s21, 256, %s2352_s22, %s2330_s26   ;;  %vm2322_vm2 = vcmask 15368   ;;  %v2320_v43 = vld [vmem:[%s4407_s8] sm:$0xff]  ;;  %vm2327_vm3 = vcmask 23568  }
 0x4f7   : > { %v2315_v8 = vpop.xlane.xlu1 %2314 }
 0x4f8   : > { %v2321_v62 = vadd.f32 %v2320_v43, %v2315_v8 }
 0x4fa   : > { %2323 = vst.msk [vmem:[%s4407_s8] sm:$0xff] %vm2322_vm2, %v2321_v62 }
 0x501   : > { %v2324_v60 = vld [vmem:[%s4407_s8] sm:$0xff] }
 0x502   : > { %v2326_v28 = vadd.f32 %v2325_v56, %v2324_v60 }
 0x504   : > { %2328 = vst.msk [vmem:[%s4407_s8] sm:$0xff] %vm2327_vm3, %v2326_v28 }
 0x505 PF: > { %s2366_s24 = sand.u32 1, %s2850_s15   ;;  %p2547_p1 = pnand %p2471_p12, %p2971_p11 }
 0x506   : > { %s2367_s28 = scalar_lea.sflag [#allocation6], %s2366_s24 }
 0x507   : > { %p2548_p2 = pneg %p2547_p1 }
 0x509   : > { %2845 = dma.done.wait (%p2548_p2), %s2367_s28, 256  }
 0x50a   : > { %2847 = vsyncadd (%p2548_p2), %s2367_s28, 4294967040  ;;  %s21_s20 = sadd.s32 1, %s2870_s20   ;;  %s4567_s15 = smov %s2854_s16 }
 0x50b   : > { %p18_p9 = scmp.ge.s32.totalorder %s21_s20, 4   ;;  %s4568_s16 = smov %s2858_s17 }
 0x50c   : > { %s4569_s17 = smov %s2969_s29  ;;  %s4570_s18 = smov %s2866_s19 }
 0x50d   : > { %s4571_s19 = smov %s4573_s23  ;;  %20 = sbr.rel (!%p18_p9) target bundleno = 6 (0x6), region = 104 }
 0x512   :  { %2380 = vsyncpa [#allocation5], 1 }
 0x513   :  { %2382 = vsyncpa [#allocation5 + $0x1], 1 }
 0x514   :  { %2383 = vsyncpa [#allocation6], 1 }
 0x515   :  { %2385 = vsyncpa [#allocation6 + $0x1], 1 }

</bundles_post_ra>
